<compile_context>
chip_gen: v6e
topology: v6e:2x2x1
jax: 0.10.0
libtpu: 0.0.40
codegen_flags: <defaults>
</compile_context>

<pallas_src>
import functools

import jax
import jax.numpy as jnp
from jax import lax
from jax.experimental import pallas as pl
from jax.experimental.pallas import tpu as pltpu


def _round_up(x, m):
    return (x + m - 1) // m * m


def _cdiv(a, b):
    return -(-a // b)


# ----------------------------- Pallas kernels ------------------------------ #
def _conv_gdn_kernel(p_ref, w_ref, b_ref, g_ref, beta_ref, o_ref):
    # p_ref:    [TR, K_pad]     bf16 im2col patch tile (streamed, double-buffered)
    # w_ref:    [K_pad, C_pad]  bf16 flattened conv weight (VMEM-resident)
    # b_ref:    [1, C_pad]      f32 bias (resident; padded lanes = 0)
    # g_ref:    [C_pad, C_pad]  bf16 gamma^T (resident; padded rows/cols = 0)
    # beta_ref: [1, C_pad]      f32 beta  (resident; padded lanes = 1)
    # o_ref:    [TR, C_pad]     bf16 output tile (lane-dense, 128-multiple)
    y = jnp.dot(p_ref[...], w_ref[...], preferred_element_type=jnp.float32)
    y = y + b_ref[...]
    # GDN: y * rsqrt(beta + gamma @ y^2).  The norm matmul runs in bf16 on the
    # MXU (single pass on v5e/v6e/v7x); the add + rsqrt stay in f32.
    y2 = (y * y).astype(jnp.bfloat16)
    norm = jnp.dot(y2, g_ref[...], preferred_element_type=jnp.float32)
    norm = norm + beta_ref[...]
    # Clamp guards rsqrt against non-positive norms (padded rows / arbitrary
    # checkpoint weights); no-op for the usual non-negative GDN params.
    y = y * lax.rsqrt(jnp.maximum(norm, 1e-12))
    o_ref[...] = y.astype(o_ref.dtype)


def _conv_bias_kernel(p_ref, w_ref, b_ref, o_ref):
    # Final layer: conv + bias only (gamma/beta never DMA'd).
    y = jnp.dot(p_ref[...], w_ref[...], preferred_element_type=jnp.float32)
    o_ref[...] = (y + b_ref[...]).astype(o_ref.dtype)


# --------------------------- tiling / VMEM knobs ---------------------------- #
@functools.lru_cache(maxsize=1)
def _device_knobs():
    """(vmem_limit_bytes, tile_budget_bytes, max_block_rows) per TPU generation."""
    try:
        kind = jax.devices()[0].device_kind.lower()
    except Exception:
        kind = ""
    if ("v4" in kind) or ("v5" in kind) or ("v6" in kind):
        # 128 MiB physical VMEM, single TensorCore: big tiles, high limit.
        return 100 * 1024 * 1024, 80 * 1024 * 1024, 2048
    # v7x (64 MiB VMEM per TC) or unknown: stay conservative.
    return 48 * 1024 * 1024, 40 * 1024 * 1024, 1024


def _pick_tile_rows(n_rows, k_pad, c_pad, out_bytes, tile_budget, max_rows):
    """Largest row tile that fits the VMEM budget, with >= 2 grid blocks."""
    # Resident params: bf16 weight + bf16 gamma^T + small f32 bias/beta.
    resident = k_pad * c_pad * 2 + c_pad * c_pad * 2 + 2 * c_pad * 4
    # Streamed per row: double-buffered bf16 patches + double-buffered output.
    per_row = 2 * (k_pad * 2 + c_pad * out_bytes)
    budget_rows = max((tile_budget - resident) // per_row, 8)
    budget_rows = max(budget_rows // 8 * 8, 8)
    # At least 2 grid blocks when the row count allows (v7x megacore sharding;
    # near-free on single-TC v5e/v6e).
    half_rows = _round_up(max(_cdiv(n_rows, 2), 1), 8)
    return max(8, min(max_rows, budget_rows, half_rows))


# ----------------------------- per-layer call ------------------------------- #
def conv_layer_pallas(patches, layer):
    """Fused conv-as-matmul (+bias) and optional GDN over im2col patches."""
    R, K = patches.shape
    k_pad, c_pad, cout = layer["k_pad"], layer["c_pad"], layer["cout"]
    out_dtype = layer["out_dtype"]
    apply_gdn = layer["apply_gdn"]

    vmem_limit, tile_budget, max_rows = _device_knobs()
    out_bytes = jnp.dtype(out_dtype).itemsize
    tr = _pick_tile_rows(R, k_pad, c_pad, out_bytes, tile_budget, max_rows)
    r_pad = _round_up(R, tr)

    patches_p = jnp.pad(patches.astype(jnp.bfloat16),
                        ((0, r_pad - R), (0, k_pad - K)))

    def resident(shape):
        return pl.BlockSpec(shape, lambda i: (0, 0))

    in_specs = [
        pl.BlockSpec((tr, k_pad), lambda i: (i, 0)),   # streamed patches
        resident((k_pad, c_pad)),                       # resident weight
        resident((1, c_pad)),                           # resident bias
    ]
    args = [patches_p, layer["w"], layer["b"]]
    if apply_gdn:
        in_specs += [resident((c_pad, c_pad)),          # resident gamma^T (bf16)
                     resident((1, c_pad))]              # resident beta
        args += [layer["gamma_t"], layer["beta"]]
        kernel = _conv_gdn_kernel
    else:
        kernel = _conv_bias_kernel

    out = pl.pallas_call(
        kernel,
        out_shape=jax.ShapeDtypeStruct((r_pad, c_pad), out_dtype),
        grid=(r_pad // tr,),
        in_specs=in_specs,
        out_specs=pl.BlockSpec((tr, c_pad), lambda i: (i, 0)),
        compiler_params=pltpu.CompilerParams(
            dimension_semantics=("parallel",),   # shard R blocks across TCs (v7x)
            vmem_limit_bytes=vmem_limit,
        ),
    )(*args)
    return out[:R, :cout]


# ------------------------------ JAX glue ---------------------------------- #
def im2col(x_nhwc, k=5, s=2, p=2):
    """5x5 stride-2 pad-2 patches (matches nn.Conv2d(k=5, s=2, padding=2)).

    Emitted in bf16 to halve the HBM footprint of the k*k duplication.
    """
    # TODO(synk): build patches inside the kernel (haloed row tiles + k*k
    # shifted matmuls) to avoid materializing the duplicated matrix in HBM.
    x_nhwc = x_nhwc.astype(jnp.bfloat16)
    B, H, W, C = x_nhwc.shape
    xp = jnp.pad(x_nhwc, ((0, 0), (p, p), (p, p), (0, 0)))
    Ho = (H + 2 * p - k) // s + 1
    Wo = (W + 2 * p - k) // s + 1
    cols = []
    for kh in range(k):
        for kw in range(k):
            sl = lax.slice(
                xp,
                (0, kh, kw, 0),
                (B, kh + s * (Ho - 1) + 1, kw + s * (Wo - 1) + 1, C),
                (1, s, s, 1),
            )
            cols.append(sl)                       # [B, Ho, Wo, C]
    patches = jnp.stack(cols, axis=3)             # [B, Ho, Wo, k*k, C]
    return patches.reshape(B * Ho * Wo, k * k * C), (B, Ho, Wo)


def apply_layer(x_nhwc, layer):
    patches, (B, Ho, Wo) = im2col(x_nhwc)
    y = conv_layer_pallas(patches, layer)
    return y.reshape(B, Ho, Wo, layer["cout"])


def init_params(key, in_channels, N, M, k=5):
    """Deterministic synthetic parameters (shapes per module __init__).

    Note: real PyTorch Conv2d weights are (Cout, Cin, kh, kw); they must be
    permuted to (kh, kw, Cin, Cout) before flattening to match im2col order.
    """
    dims = [(in_channels, N), (N, N), (N, N), (N, M)]
    params = []
    for i, (cin, cout) in enumerate(dims):
        kw_key, kb_key = jax.random.split(jax.random.fold_in(key, i))
        w = jax.random.normal(kw_key, (k, k, cin, cout), jnp.float32) * 0.05
        b = jax.random.normal(kb_key, (cout,), jnp.float32) * 0.01
        # GDN params: gamma = 0.1 * I, beta = 1 (compressai-style init).
        gamma = 0.1 * jnp.eye(cout, dtype=jnp.float32)
        beta = jnp.ones((cout,), jnp.float32)
        params.append(
            dict(
                w=w.reshape(k * k * cin, cout),   # [k*k*Cin, Cout]
                b=b,
                gamma_t=gamma.T,                  # norm_i = sum_j gamma[i,j]*x_j^2
                beta=beta,
            )
        )
    return params


def prepare_params(raw_params):
    """Pad + cast parameters ONCE, outside the jitted forward (no per-call HLOs)."""
    prepped = []
    n_layers = len(raw_params)
    for i, p in enumerate(raw_params):
        K, cout = p["w"].shape
        k_pad = _round_up(K, 128)      # lane-dense streamed patches / MXU depth
        c_pad = _round_up(cout, 128)   # lane-dense output -> unmasked stores
        apply_gdn = i < n_layers - 1
        layer = dict(
            w=jnp.pad(p["w"].astype(jnp.bfloat16),
                      ((0, k_pad - K), (0, c_pad - cout))),
            b=jnp.pad(p["b"].reshape(1, cout).astype(jnp.float32),
                      ((0, 0), (0, c_pad - cout))),
            k_pad=k_pad,
            c_pad=c_pad,
            cout=cout,
            apply_gdn=apply_gdn,
            # Intermediate activations stay bf16 (next layer's im2col consumes
            # bf16); the final conv output is materialized in f32.
            out_dtype=jnp.bfloat16 if apply_gdn else jnp.float32,
        )
        if apply_gdn:
            layer["gamma_t"] = jnp.pad(p["gamma_t"].astype(jnp.bfloat16),
                                       ((0, c_pad - cout), (0, c_pad - cout)))
            # Pad beta with ONES: rsqrt on dead lanes stays finite (sliced off).
            layer["beta"] = jnp.pad(
                p["beta"].reshape(1, cout).astype(jnp.float32),
                ((0, 0), (0, c_pad - cout)), constant_values=1.0)
        prepped.append(layer)
    return prepped


def hyperprior_analysis(x_nchw, params):
    # TODO(synk): fuse all four layers into one pallas_call (activations and
    # weights fit in VMEM) to remove intermediate HBM round trips entirely.
    x = jnp.transpose(x_nchw, (0, 2, 3, 1))       # NCHW -> NHWC
    for layer in params:
        x = apply_layer(x, layer)                 # last layer has no GDN
    return jnp.transpose(x, (0, 3, 1, 2)).astype(jnp.float32)   # NHWC -> NCHW


# --------------------------------- main ------------------------------------ #
if __name__ == "__main__":
    key = jax.random.PRNGKey(0)
    B, Cin, H, W = 2, 3, 16, 16   # in_channels defaults to 3 in the module
    N, M = 32, 48

    x = jax.random.normal(jax.random.fold_in(key, 1000), (B, Cin, H, W),
                          jnp.float32)
    raw_params = init_params(key, Cin, N, M)
    params = prepare_params(raw_params)           # pad/cast hoisted out of jit

    # Bind params via partial so static metadata (cout, k_pad, ...) stays
    # Python-level and padded weights are baked in as constants.
    fwd = jax.jit(functools.partial(hyperprior_analysis, params=params))
    out = jax.block_until_ready(fwd(x))

    # 16 -> 8 -> 4 -> 2 -> 1 spatial downsampling, final channels = M
    assert out.shape == (B, M, 1, 1), out.shape
    assert bool(jnp.all(jnp.isfinite(out)))
    print("KERNEL_OK")
</pallas_src>

<mosaic_0001>
module attributes {stable_mosaic.version = 11 : i64} {
  func.func @_conv_gdn_kernel(%arg0: i32, %arg1: memref<64x128xbf16, #tpu.memory_space<vmem>>, %arg2: memref<128x128xbf16, #tpu.memory_space<vmem>>, %arg3: memref<1x128xf32, #tpu.memory_space<vmem>>, %arg4: memref<128x128xbf16, #tpu.memory_space<vmem>>, %arg5: memref<1x128xf32, #tpu.memory_space<vmem>>, %arg6: memref<64x128xbf16, #tpu.memory_space<vmem>>) attributes {dimension_semantics = [#tpu.dimension_semantics<parallel>], iteration_bounds = array<i64: 2>, scalar_prefetch = 0 : i64, scratch_operands = 0 : i64, tpu.core_type = #tpu.core_type<tc>, window_params = [{transform_indices = @transform_0, window_bounds = array<i64: 64, 128>}, {pipeline_mode = #tpu.pipeline_mode<synchronous>, transform_indices = @transform_1, window_bounds = array<i64: 128, 128>}, {pipeline_mode = #tpu.pipeline_mode<synchronous>, transform_indices = @transform_2, window_bounds = array<i64: 1, 128>}, {pipeline_mode = #tpu.pipeline_mode<synchronous>, transform_indices = @transform_3, window_bounds = array<i64: 128, 128>}, {pipeline_mode = #tpu.pipeline_mode<synchronous>, transform_indices = @transform_4, window_bounds = array<i64: 1, 128>}, {transform_indices = @transform_5, window_bounds = array<i64: 64, 128>}]} {
    %c0 = arith.constant 0 : index
    %c0_0 = arith.constant 0 : index
    %0 = vector.load %arg1[%c0, %c0_0] : memref<64x128xbf16, #tpu.memory_space<vmem>>, vector<64x128xbf16>
    %c0_1 = arith.constant 0 : index
    %c0_2 = arith.constant 0 : index
    %1 = vector.load %arg2[%c0_1, %c0_2] : memref<128x128xbf16, #tpu.memory_space<vmem>>, vector<128x128xbf16>
    %cst = arith.constant dense<0.000000e+00> : vector<64x128xf32>
    %2 = tpu.matmul %0, %1, %cst {dimension_numbers = #tpu.dot_dimension_numbers<[1], [0], [0], [1], [0, 0, 1, 1], [], []>} : vector<64x128xbf16>, vector<128x128xbf16>, vector<64x128xf32> -> vector<64x128xf32>
    %c0_3 = arith.constant 0 : index
    %c0_4 = arith.constant 0 : index
    %3 = vector.load %arg3[%c0_3, %c0_4] : memref<1x128xf32, #tpu.memory_space<vmem>>, vector<1x128xf32>
    %4 = vector.broadcast %3 : vector<1x128xf32> to vector<64x128xf32>
    %5 = arith.addf %2, %4 : vector<64x128xf32>
    %6 = arith.mulf %5, %5 : vector<64x128xf32>
    %7 = arith.truncf %6 : vector<64x128xf32> to vector<64x128xbf16>
    %c0_5 = arith.constant 0 : index
    %c0_6 = arith.constant 0 : index
    %8 = vector.load %arg4[%c0_5, %c0_6] : memref<128x128xbf16, #tpu.memory_space<vmem>>, vector<128x128xbf16>
    %cst_7 = arith.constant dense<0.000000e+00> : vector<64x128xf32>
    %9 = tpu.matmul %7, %8, %cst_7 {dimension_numbers = #tpu.dot_dimension_numbers<[1], [0], [0], [1], [0, 0, 1, 1], [], []>} : vector<64x128xbf16>, vector<128x128xbf16>, vector<64x128xf32> -> vector<64x128xf32>
    %c0_8 = arith.constant 0 : index
    %c0_9 = arith.constant 0 : index
    %10 = vector.load %arg5[%c0_8, %c0_9] : memref<1x128xf32, #tpu.memory_space<vmem>>, vector<1x128xf32>
    %11 = vector.broadcast %10 : vector<1x128xf32> to vector<64x128xf32>
    %12 = arith.addf %9, %11 : vector<64x128xf32>
    %cst_10 = arith.constant 9.99999996E-13 : f32
    %13 = vector.broadcast %cst_10 : f32 to vector<64x128xf32>
    %14 = arith.maximumf %12, %13 : vector<64x128xf32>
    %15 = math.rsqrt %14 : vector<64x128xf32>
    %16 = arith.mulf %5, %15 : vector<64x128xf32>
    %17 = arith.truncf %16 : vector<64x128xf32> to vector<64x128xbf16>
    %c0_11 = arith.constant 0 : index
    %c0_12 = arith.constant 0 : index
    %18 = vector.load %arg6[%c0_11, %c0_12] : memref<64x128xbf16, #tpu.memory_space<vmem>>, vector<64x128xbf16>
    tpu.vector_store %arg6[%c0_11, %c0_12], %17 {strides = array<i32>} : memref<64x128xbf16, #tpu.memory_space<vmem>>, vector<64x128xbf16>,
    return
  }
  func.func @transform_0(%arg0: i32) -> (i32, i32) {
    %c0_i32 = arith.constant 0 : i32
    %c0_i32_0 = arith.constant 0 : i32
    return %arg0, %c0_i32 : i32, i32
  }
  func.func @transform_1(%arg0: i32) -> (i32, i32) {
    %c0_i32 = arith.constant 0 : i32
    %c0_i32_0 = arith.constant 0 : i32
    %c0_i32_1 = arith.constant 0 : i32
    return %c0_i32, %c0_i32_0 : i32, i32
  }
  func.func @transform_2(%arg0: i32) -> (i32, i32) {
    %c0_i32 = arith.constant 0 : i32
    %c0_i32_0 = arith.constant 0 : i32
    %c0_i32_1 = arith.constant 0 : i32
    return %c0_i32, %c0_i32_0 : i32, i32
  }
  func.func @transform_3(%arg0: i32) -> (i32, i32) {
    %c0_i32 = arith.constant 0 : i32
    %c0_i32_0 = arith.constant 0 : i32
    %c0_i32_1 = arith.constant 0 : i32
    return %c0_i32, %c0_i32_0 : i32, i32
  }
  func.func @transform_4(%arg0: i32) -> (i32, i32) {
    %c0_i32 = arith.constant 0 : i32
    %c0_i32_0 = arith.constant 0 : i32
    %c0_i32_1 = arith.constant 0 : i32
    return %c0_i32, %c0_i32_0 : i32, i32
  }
  func.func @transform_5(%arg0: i32) -> (i32, i32) {
    %c0_i32 = arith.constant 0 : i32
    %c0_i32_0 = arith.constant 0 : i32
    return %arg0, %c0_i32 : i32, i32
  }
}

module attributes {stable_mosaic.version = 11 : i64} {
  func.func @_conv_gdn_kernel(%arg0: i32, %arg1: memref<16x896xbf16, #tpu.memory_space<vmem>>, %arg2: memref<896x128xbf16, #tpu.memory_space<vmem>>, %arg3: memref<1x128xf32, #tpu.memory_space<vmem>>, %arg4: memref<128x128xbf16, #tpu.memory_space<vmem>>, %arg5: memref<1x128xf32, #tpu.memory_space<vmem>>, %arg6: memref<16x128xbf16, #tpu.memory_space<vmem>>) attributes {dimension_semantics = [#tpu.dimension_semantics<parallel>], iteration_bounds = array<i64: 2>, scalar_prefetch = 0 : i64, scratch_operands = 0 : i64, tpu.core_type = #tpu.core_type<tc>, window_params = [{transform_indices = @transform_0, window_bounds = array<i64: 16, 896>}, {pipeline_mode = #tpu.pipeline_mode<synchronous>, transform_indices = @transform_1, window_bounds = array<i64: 896, 128>}, {pipeline_mode = #tpu.pipeline_mode<synchronous>, transform_indices = @transform_2, window_bounds = array<i64: 1, 128>}, {pipeline_mode = #tpu.pipeline_mode<synchronous>, transform_indices = @transform_3, window_bounds = array<i64: 128, 128>}, {pipeline_mode = #tpu.pipeline_mode<synchronous>, transform_indices = @transform_4, window_bounds = array<i64: 1, 128>}, {transform_indices = @transform_5, window_bounds = array<i64: 16, 128>}]} {
    %c0 = arith.constant 0 : index
    %c0_0 = arith.constant 0 : index
    %0 = vector.load %arg1[%c0, %c0_0] : memref<16x896xbf16, #tpu.memory_space<vmem>>, vector<16x896xbf16>
    %c0_1 = arith.constant 0 : index
    %c0_2 = arith.constant 0 : index
    %1 = vector.load %arg2[%c0_1, %c0_2] : memref<896x128xbf16, #tpu.memory_space<vmem>>, vector<896x128xbf16>
    %cst = arith.constant dense<0.000000e+00> : vector<16x128xf32>
    %2 = tpu.matmul %0, %1, %cst {dimension_numbers = #tpu.dot_dimension_numbers<[1], [0], [0], [1], [0, 0, 1, 1], [], []>} : vector<16x896xbf16>, vector<896x128xbf16>, vector<16x128xf32> -> vector<16x128xf32>
    %c0_3 = arith.constant 0 : index
    %c0_4 = arith.constant 0 : index
    %3 = vector.load %arg3[%c0_3, %c0_4] : memref<1x128xf32, #tpu.memory_space<vmem>>, vector<1x128xf32>
    %4 = vector.broadcast %3 : vector<1x128xf32> to vector<16x128xf32>
    %5 = arith.addf %2, %4 : vector<16x128xf32>
    %6 = arith.mulf %5, %5 : vector<16x128xf32>
    %7 = arith.truncf %6 : vector<16x128xf32> to vector<16x128xbf16>
    %c0_5 = arith.constant 0 : index
    %c0_6 = arith.constant 0 : index
    %8 = vector.load %arg4[%c0_5, %c0_6] : memref<128x128xbf16, #tpu.memory_space<vmem>>, vector<128x128xbf16>
    %cst_7 = arith.constant dense<0.000000e+00> : vector<16x128xf32>
    %9 = tpu.matmul %7, %8, %cst_7 {dimension_numbers = #tpu.dot_dimension_numbers<[1], [0], [0], [1], [0, 0, 1, 1], [], []>} : vector<16x128xbf16>, vector<128x128xbf16>, vector<16x128xf32> -> vector<16x128xf32>
    %c0_8 = arith.constant 0 : index
    %c0_9 = arith.constant 0 : index
    %10 = vector.load %arg5[%c0_8, %c0_9] : memref<1x128xf32, #tpu.memory_space<vmem>>, vector<1x128xf32>
    %11 = vector.broadcast %10 : vector<1x128xf32> to vector<16x128xf32>
    %12 = arith.addf %9, %11 : vector<16x128xf32>
    %cst_10 = arith.constant 9.99999996E-13 : f32
    %13 = vector.broadcast %cst_10 : f32 to vector<16x128xf32>
    %14 = arith.maximumf %12, %13 : vector<16x128xf32>
    %15 = math.rsqrt %14 : vector<16x128xf32>
    %16 = arith.mulf %5, %15 : vector<16x128xf32>
    %17 = arith.truncf %16 : vector<16x128xf32> to vector<16x128xbf16>
    %c0_11 = arith.constant 0 : index
    %c0_12 = arith.constant 0 : index
    %18 = vector.load %arg6[%c0_11, %c0_12] : memref<16x128xbf16, #tpu.memory_space<vmem>>, vector<16x128xbf16>
    tpu.vector_store %arg6[%c0_11, %c0_12], %17 {strides = array<i32>} : memref<16x128xbf16, #tpu.memory_space<vmem>>, vector<16x128xbf16>,
    return
  }
  func.func @transform_0(%arg0: i32) -> (i32, i32) {
    %c0_i32 = arith.constant 0 : i32
    %c0_i32_0 = arith.constant 0 : i32
    return %arg0, %c0_i32 : i32, i32
  }
  func.func @transform_1(%arg0: i32) -> (i32, i32) {
    %c0_i32 = arith.constant 0 : i32
    %c0_i32_0 = arith.constant 0 : i32
    %c0_i32_1 = arith.constant 0 : i32
    return %c0_i32, %c0_i32_0 : i32, i32
  }
  func.func @transform_2(%arg0: i32) -> (i32, i32) {
    %c0_i32 = arith.constant 0 : i32
    %c0_i32_0 = arith.constant 0 : i32
    %c0_i32_1 = arith.constant 0 : i32
    return %c0_i32, %c0_i32_0 : i32, i32
  }
  func.func @transform_3(%arg0: i32) -> (i32, i32) {
    %c0_i32 = arith.constant 0 : i32
    %c0_i32_0 = arith.constant 0 : i32
    %c0_i32_1 = arith.constant 0 : i32
    return %c0_i32, %c0_i32_0 : i32, i32
  }
  func.func @transform_4(%arg0: i32) -> (i32, i32) {
    %c0_i32 = arith.constant 0 : i32
    %c0_i32_0 = arith.constant 0 : i32
    %c0_i32_1 = arith.constant 0 : i32
    return %c0_i32, %c0_i32_0 : i32, i32
  }
  func.func @transform_5(%arg0: i32) -> (i32, i32) {
    %c0_i32 = arith.constant 0 : i32
    %c0_i32_0 = arith.constant 0 : i32
    return %arg0, %c0_i32 : i32, i32
  }
}

module attributes {stable_mosaic.version = 11 : i64} {
  func.func @_conv_gdn_kernel(%arg0: i32, %arg1: memref<8x896xbf16, #tpu.memory_space<vmem>>, %arg2: memref<896x128xbf16, #tpu.memory_space<vmem>>, %arg3: memref<1x128xf32, #tpu.memory_space<vmem>>, %arg4: memref<128x128xbf16, #tpu.memory_space<vmem>>, %arg5: memref<1x128xf32, #tpu.memory_space<vmem>>, %arg6: memref<8x128xbf16, #tpu.memory_space<vmem>>) attributes {dimension_semantics = [#tpu.dimension_semantics<parallel>], iteration_bounds = array<i64: 1>, scalar_prefetch = 0 : i64, scratch_operands = 0 : i64, tpu.core_type = #tpu.core_type<tc>, window_params = [{transform_indices = @transform_0, window_bounds = array<i64: 8, 896>}, {pipeline_mode = #tpu.pipeline_mode<synchronous>, transform_indices = @transform_1, window_bounds = array<i64: 896, 128>}, {pipeline_mode = #tpu.pipeline_mode<synchronous>, transform_indices = @transform_2, window_bounds = array<i64: 1, 128>}, {pipeline_mode = #tpu.pipeline_mode<synchronous>, transform_indices = @transform_3, window_bounds = array<i64: 128, 128>}, {pipeline_mode = #tpu.pipeline_mode<synchronous>, transform_indices = @transform_4, window_bounds = array<i64: 1, 128>}, {transform_indices = @transform_5, window_bounds = array<i64: 8, 128>}]} {
    %c0 = arith.constant 0 : index
    %c0_0 = arith.constant 0 : index
    %0 = vector.load %arg1[%c0, %c0_0] : memref<8x896xbf16, #tpu.memory_space<vmem>>, vector<8x896xbf16>
    %c0_1 = arith.constant 0 : index
    %c0_2 = arith.constant 0 : index
    %1 = vector.load %arg2[%c0_1, %c0_2] : memref<896x128xbf16, #tpu.memory_space<vmem>>, vector<896x128xbf16>
    %cst = arith.constant dense<0.000000e+00> : vector<8x128xf32>
    %2 = tpu.matmul %0, %1, %cst {dimension_numbers = #tpu.dot_dimension_numbers<[1], [0], [0], [1], [0, 0, 1, 1], [], []>} : vector<8x896xbf16>, vector<896x128xbf16>, vector<8x128xf32> -> vector<8x128xf32>
    %c0_3 = arith.constant 0 : index
    %c0_4 = arith.constant 0 : index
    %3 = vector.load %arg3[%c0_3, %c0_4] : memref<1x128xf32, #tpu.memory_space<vmem>>, vector<1x128xf32>
    %4 = vector.broadcast %3 : vector<1x128xf32> to vector<8x128xf32>
    %5 = arith.addf %2, %4 : vector<8x128xf32>
    %6 = arith.mulf %5, %5 : vector<8x128xf32>
    %7 = arith.truncf %6 : vector<8x128xf32> to vector<8x128xbf16>
    %c0_5 = arith.constant 0 : index
    %c0_6 = arith.constant 0 : index
    %8 = vector.load %arg4[%c0_5, %c0_6] : memref<128x128xbf16, #tpu.memory_space<vmem>>, vector<128x128xbf16>
    %cst_7 = arith.constant dense<0.000000e+00> : vector<8x128xf32>
    %9 = tpu.matmul %7, %8, %cst_7 {dimension_numbers = #tpu.dot_dimension_numbers<[1], [0], [0], [1], [0, 0, 1, 1], [], []>} : vector<8x128xbf16>, vector<128x128xbf16>, vector<8x128xf32> -> vector<8x128xf32>
    %c0_8 = arith.constant 0 : index
    %c0_9 = arith.constant 0 : index
    %10 = vector.load %arg5[%c0_8, %c0_9] : memref<1x128xf32, #tpu.memory_space<vmem>>, vector<1x128xf32>
    %11 = vector.broadcast %10 : vector<1x128xf32> to vector<8x128xf32>
    %12 = arith.addf %9, %11 : vector<8x128xf32>
    %cst_10 = arith.constant 9.99999996E-13 : f32
    %13 = vector.broadcast %cst_10 : f32 to vector<8x128xf32>
    %14 = arith.maximumf %12, %13 : vector<8x128xf32>
    %15 = math.rsqrt %14 : vector<8x128xf32>
    %16 = arith.mulf %5, %15 : vector<8x128xf32>
    %17 = arith.truncf %16 : vector<8x128xf32> to vector<8x128xbf16>
    %c0_11 = arith.constant 0 : index
    %c0_12 = arith.constant 0 : index
    %18 = vector.load %arg6[%c0_11, %c0_12] : memref<8x128xbf16, #tpu.memory_space<vmem>>, vector<8x128xbf16>
    tpu.vector_store %arg6[%c0_11, %c0_12], %17 {strides = array<i32>} : memref<8x128xbf16, #tpu.memory_space<vmem>>, vector<8x128xbf16>,
    return
  }
  func.func @transform_0(%arg0: i32) -> (i32, i32) {
    %c0_i32 = arith.constant 0 : i32
    %c0_i32_0 = arith.constant 0 : i32
    return %arg0, %c0_i32 : i32, i32
  }
  func.func @transform_1(%arg0: i32) -> (i32, i32) {
    %c0_i32 = arith.constant 0 : i32
    %c0_i32_0 = arith.constant 0 : i32
    %c0_i32_1 = arith.constant 0 : i32
    return %c0_i32, %c0_i32_0 : i32, i32
  }
  func.func @transform_2(%arg0: i32) -> (i32, i32) {
    %c0_i32 = arith.constant 0 : i32
    %c0_i32_0 = arith.constant 0 : i32
    %c0_i32_1 = arith.constant 0 : i32
    return %c0_i32, %c0_i32_0 : i32, i32
  }
  func.func @transform_3(%arg0: i32) -> (i32, i32) {
    %c0_i32 = arith.constant 0 : i32
    %c0_i32_0 = arith.constant 0 : i32
    %c0_i32_1 = arith.constant 0 : i32
    return %c0_i32, %c0_i32_0 : i32, i32
  }
  func.func @transform_4(%arg0: i32) -> (i32, i32) {
    %c0_i32 = arith.constant 0 : i32
    %c0_i32_0 = arith.constant 0 : i32
    %c0_i32_1 = arith.constant 0 : i32
    return %c0_i32, %c0_i32_0 : i32, i32
  }
  func.func @transform_5(%arg0: i32) -> (i32, i32) {
    %c0_i32 = arith.constant 0 : i32
    %c0_i32_0 = arith.constant 0 : i32
    return %arg0, %c0_i32 : i32, i32
  }
}

module attributes {stable_mosaic.version = 11 : i64} {
  func.func @_conv_bias_kernel(%arg0: i32, %arg1: memref<8x896xbf16, #tpu.memory_space<vmem>>, %arg2: memref<896x128xbf16, #tpu.memory_space<vmem>>, %arg3: memref<1x128xf32, #tpu.memory_space<vmem>>, %arg4: memref<8x128xf32, #tpu.memory_space<vmem>>) attributes {dimension_semantics = [#tpu.dimension_semantics<parallel>], iteration_bounds = array<i64: 1>, scalar_prefetch = 0 : i64, scratch_operands = 0 : i64, tpu.core_type = #tpu.core_type<tc>, window_params = [{transform_indices = @transform_0, window_bounds = array<i64: 8, 896>}, {pipeline_mode = #tpu.pipeline_mode<synchronous>, transform_indices = @transform_1, window_bounds = array<i64: 896, 128>}, {pipeline_mode = #tpu.pipeline_mode<synchronous>, transform_indices = @transform_2, window_bounds = array<i64: 1, 128>}, {transform_indices = @transform_3, window_bounds = array<i64: 8, 128>}]} {
    %c0 = arith.constant 0 : index
    %c0_0 = arith.constant 0 : index
    %0 = vector.load %arg1[%c0, %c0_0] : memref<8x896xbf16, #tpu.memory_space<vmem>>, vector<8x896xbf16>
    %c0_1 = arith.constant 0 : index
    %c0_2 = arith.constant 0 : index
    %1 = vector.load %arg2[%c0_1, %c0_2] : memref<896x128xbf16, #tpu.memory_space<vmem>>, vector<896x128xbf16>
    %cst = arith.constant dense<0.000000e+00> : vector<8x128xf32>
    %2 = tpu.matmul %0, %1, %cst {dimension_numbers = #tpu.dot_dimension_numbers<[1], [0], [0], [1], [0, 0, 1, 1], [], []>} : vector<8x896xbf16>, vector<896x128xbf16>, vector<8x128xf32> -> vector<8x128xf32>
    %c0_3 = arith.constant 0 : index
    %c0_4 = arith.constant 0 : index
    %3 = vector.load %arg3[%c0_3, %c0_4] : memref<1x128xf32, #tpu.memory_space<vmem>>, vector<1x128xf32>
    %4 = vector.broadcast %3 : vector<1x128xf32> to vector<8x128xf32>
    %5 = arith.addf %2, %4 : vector<8x128xf32>
    %c0_5 = arith.constant 0 : index
    %c0_6 = arith.constant 0 : index
    %6 = vector.load %arg4[%c0_5, %c0_6] : memref<8x128xf32, #tpu.memory_space<vmem>>, vector<8x128xf32>
    tpu.vector_store %arg4[%c0_5, %c0_6], %5 {strides = array<i32>} : memref<8x128xf32, #tpu.memory_space<vmem>>, vector<8x128xf32>,
    return
  }
  func.func @transform_0(%arg0: i32) -> (i32, i32) {
    %c0_i32 = arith.constant 0 : i32
    %c0_i32_0 = arith.constant 0 : i32
    return %arg0, %c0_i32 : i32, i32
  }
  func.func @transform_1(%arg0: i32) -> (i32, i32) {
    %c0_i32 = arith.constant 0 : i32
    %c0_i32_0 = arith.constant 0 : i32
    %c0_i32_1 = arith.constant 0 : i32
    return %c0_i32, %c0_i32_0 : i32, i32
  }
  func.func @transform_2(%arg0: i32) -> (i32, i32) {
    %c0_i32 = arith.constant 0 : i32
    %c0_i32_0 = arith.constant 0 : i32
    %c0_i32_1 = arith.constant 0 : i32
    return %c0_i32, %c0_i32_0 : i32, i32
  }
  func.func @transform_3(%arg0: i32) -> (i32, i32) {
    %c0_i32 = arith.constant 0 : i32
    %c0_i32_0 = arith.constant 0 : i32
    return %arg0, %c0_i32 : i32, i32
  }
}

</mosaic_0001>

<bundles_post_ra>
// kernel: hyperprior_analysis.4
= control target key start
LH: loop header
LB: loop body
LE: loop exit
PB: predicated region body
PF: predicated region fallthrough
CT: control target
= control target key end

     0   :  { %s891_s18 = smov 0   ;;  %s1010_s0 = inlined_call_operand.vmem [shape: bf16[128,128], index: 0, kind: input, shape index: {}]   ;;  %s1011_s1 = inlined_call_operand.vmem [shape: bf16[128,128], index: 1, kind: input, shape index: {}]   ;;  %s1012_s2 = inlined_call_operand.vmem [shape: f32[1,128], index: 2, kind: input, shape index: {}]   ;;  %s1013_s3 = inlined_call_operand.vmem [shape: bf16[128,128], index: 3, kind: input, shape index: {}]   ;;  %s1014_s4 = inlined_call_operand.vmem [shape: f32[1,128], index: 4, kind: input, shape index: {}]   ;;  %s1015_s5 = inlined_call_operand.vmem [shape: bf16[128,128], index: 5, kind: output, shape index: {}]  }
   0x1 LB: > { %s665_s19 = sadd.s32 4294967295, %s859_s18   ;;  %p669_p0 = scmp.ge.s32.totalorder %s859_s18, 1  ;;  %s859_s18 = sphi %s891_s18, %s15_s18  }
   0x2   : > { %p188_p1 = scmp.lt.s32.totalorder %s859_s18, 3 }
   0x4   : > { %p189_p2 = pnand %p669_p0, %p188_p1 }
   0x5   : > { %s670_s22 = sshll.u32 (!%p189_p2), %s665_s19, 3 }
   0x6   : > { %192 = sbr.rel (%p189_p2) target bundleno = 480 (0x1e0), region = 40  ;;  %p217_p3 = scmp.lt.s32.totalorder (!%p189_p2), %s670_s22, 15 }
   0xb   : > { %v817_v0 = vld [vmem:[%s1011_s1 + $0x38] sm:$0xff]   ;;  %v818_v1 = vld [vmem:[%s1011_s1 + $0x30] sm:$0xff]   ;;  %s1017_s22 = smov (!%p217_p3, %s670_s22), 15  ;;  %v819_v2 = vld [vmem:[%s1011_s1 + $0x28] sm:$0xff]  }
   0xc   : > { %761 = vmatprep.subr.bf16.mxu0 %v817_v0  ;;  %s671_s27 = sshll.u32 %s1017_s22, 2  ;;  %v820_v3 = vld [vmem:[%s1011_s1 + $0x20] sm:$0xff]   ;;  %v821_v5 = vld [vmem:[%s1011_s1 + $0x18] sm:$0xff]   ;;  %v830_v7 = vld [vmem:[%s1013_s3 + $0x30] sm:$0xff]  }
   0xd   : > { %762 = vmatpush3.bf16.msra.mxu0 %v817_v0  ;;  %s916_s30 = scalar_lea.vmem %s1010_s0, %s671_s27  ;;  %v829_v6 = vld [vmem:[%s1013_s3 + $0x38] sm:$0xff]   ;;  %v822_v8 = vld [vmem:[%s1011_s1 + $0x10] sm:$0xff]   ;;  %v831_v9 = vld [vmem:[%s1013_s3 + $0x28] sm:$0xff]   ;;  %s226_s16 = scalar_lea.vmem %s1015_s5, %s671_s27 }
   0xe   : > { %763 = vmatprep.subr.bf16.mxu0 %v818_v1  ;;  %v825_v4 = vld [vmem:[%s916_s30] sm:$0xff]   ;;  %785 = vmatprep.subr.bf16.mxu1 %v829_v6  ;;  %v823_v10 = vld [vmem:[%s1011_s1 + $0x8] sm:$0xff]   ;;  %v833_v13 = vld [vmem:[%s1013_s3 + $0x18] sm:$0xff]  }
   0xf   : > { %777 = vmatprep.mubr.bf16.mxu0 %v825_v4  ;;  %786 = vmatpush3.bf16.msra.mxu1 %v829_v6  ;;  %v832_v11 = vld [vmem:[%s1013_s3 + $0x20] sm:$0xff]   ;;  %v826_v14 = vld [vmem:[%s916_s30 + $0x8] sm:$0xff]   ;;  %v827_v15 = vld [vmem:[%s916_s30 + $0x10] sm:$0xff]  }
  0x10   : > { %787 = vmatprep.subr.bf16.mxu1 %v830_v7  ;;  %v824_v12 = vld [vmem:[%s1011_s1] sm:$0xff]   ;;  %v828_v16 = vld [vmem:[%s916_s30 + $0x18] sm:$0xff]   ;;  %v834_v17 = vld [vmem:[%s1013_s3 + $0x10] sm:$0xff]  }
  0x11   : > { %764 = vmatpush3.bf16.msra.mxu0 %v818_v1  ;;  %v835_v18 = vld [vmem:[%s1013_s3 + $0x8] sm:$0xff]   ;;  %v836_v19 = vld [vmem:[%s1013_s3] sm:$0xff]  }
  0x12   : > { %765 = vmatprep.subr.bf16.mxu0 %v819_v2  ;;  %v674_v22 = vld [vmem:[%s1012_s2] ss:$0 sm:$0xff] }
  0x13   : > { %788 = vmatpush3.bf16.msra.mxu1 %v830_v7  ;;  %v687_v49 = vld [vmem:[%s1014_s4] ss:$0 sm:$0xff] }
  0x14   : > { %789 = vmatprep.subr.bf16.mxu1 %v831_v9 }
  0x15   : > { %766 = vmatpush3.bf16.msra.mxu0 %v819_v2 }
  0x16   : > { %767 = vmatprep.subr.bf16.mxu0 %v820_v3 }
  0x17   : > { %790 = vmatpush3.bf16.msra.mxu1 %v831_v9 }
  0x18   : > { %791 = vmatprep.subr.bf16.mxu1 %v832_v11 }
  0x19   : > { %768 = vmatpush3.bf16.msra.mxu0 %v820_v3 }
  0x1a   : > { %769 = vmatprep.subr.bf16.mxu0 %v821_v5 }
  0x1b   : > { %792 = vmatpush3.bf16.msra.mxu1 %v832_v11 }
  0x1c   : > { %793 = vmatprep.subr.bf16.mxu1 %v833_v13 }
  0x1d   : > { %770 = vmatpush3.bf16.msra.mxu0 %v821_v5 }
  0x1e   : > { %771 = vmatprep.subr.bf16.mxu0 %v822_v8 }
  0x1f   : > { %794 = vmatpush3.bf16.msra.mxu1 %v833_v13 }
  0x20   : > { %795 = vmatprep.subr.bf16.mxu1 %v834_v17 }
  0x21   : > { %772 = vmatpush3.bf16.msra.mxu0 %v822_v8 }
  0x22   : > { %773 = vmatprep.subr.bf16.mxu0 %v823_v10 }
  0x23   : > { %796 = vmatpush3.bf16.msra.mxu1 %v834_v17 }
  0x24   : > { %797 = vmatprep.subr.bf16.mxu1 %v835_v18 }
  0x25   : > { %774 = vmatpush3.bf16.msra.mxu0 %v823_v10 }
  0x26   : > { %775 = vmatprep.subr.bf16.mxu0 %v824_v12 }
  0x27   : > { %798 = vmatpush3.bf16.msra.mxu1 %v835_v18 }
  0x28   : > { %799 = vmatprep.subr.bf16.mxu1 %v836_v19 }
  0x29   : > { %776 = vmatpush3.bf16.msra.mxu0 %v824_v12 }
  0x2b   : > { %800 = vmatpush3.bf16.msra.mxu1 %v836_v19 }
  0x2c   : > { %778 = vmatmul.mubr.bf16.vlgmr.msra.gmra.mxu0 %v826_v14 }
  0x2d   : > { %781 = vmatprep.mubr.bf16.mxu0 %v827_v15 }
  0x34   : > { %782 = vmatmul.mubr.bf16.gmra.mxu0 %v828_v16 }
  0xec   : > { %v779_v20 = vpop.f32.mrf.mxu0 }
  0xed   : > { %v968_v26 = vadd.f32 %v779_v20, %v674_v22 }
  0xee   : > { %v366_v21 = vpop.f32.mrf.mxu0 }
  0xef   : > { %v964_v24 = vadd.f32 %v674_v22, %v366_v21  ;;  %v399_v33 = vmul.f32 %v968_v26, %v968_v26 }
  0xf0   : > { %v780_v23 = vpop.f32.mrf.mxu0 }
  0xf1   : > { %v966_v25 = vadd.f32 %v780_v23, %v674_v22  ;;  %v397_v31 = vmul.f32 %v964_v24, %v964_v24 }
  0xf2   : > { %v369_v27 = vpop.f32.mrf.mxu0 }
  0xf3   : > { %v970_v28 = vadd.f32 %v674_v22, %v369_v27  ;;  %v400_v29 = vmul.f32 %v966_v25, %v966_v25 }
  0xf4   : > { %v783_v30 = vpop.f32.mrf.mxu0 }
  0xf5   : > { %v398_v32 = vmul.f32 %v970_v28, %v970_v28  ;;  %v406_v37 = vpack.c.bf16 %v400_v29, %v399_v33  ;;  %v391_v40 = vadd.f32 %v783_v30, %v674_v22 }
  0xf6   : > { %v382_v34 = vpop.f32.mrf.mxu0 }
  0xf7   : > { %v405_v35 = vpack.c.bf16 %v398_v32, %v397_v31  ;;  %v980_v38 = vadd.f32 %v674_v22, %v382_v34  ;;  %v403_v46 = vmul.f32 %v391_v40, %v391_v40 }
  0xf8   : > { %v784_v36 = vpop.f32.mrf.mxu0 }
  0xf9   : > { %v982_v39 = vadd.f32 %v784_v36, %v674_v22  ;;  %801 = vmatprep.mubr.bf16.mxu1 %v405_v35  ;;  %v401_v44 = vmul.f32 %v980_v38, %v980_v38 }
  0xfa   : > { %v385_v41 = vpop.f32.mrf.mxu0  ;;  %802 = vmatmul.mubr.bf16.vlgmr.msra.gmra.mxu1 %v406_v37 }
  0xfb   : > { %v984_v42 = vadd.f32 %v674_v22, %v385_v41  ;;  %v404_v43 = vmul.f32 %v982_v39, %v982_v39 }
  0xfd   : > { %v402_v45 = vmul.f32 %v984_v42, %v984_v42  ;;  %v408_v48 = vpack.c.bf16 %v404_v43, %v403_v46 }
  0xff   : > { %v407_v47 = vpack.c.bf16 %v402_v45, %v401_v44 }
 0x101   : > { %805 = vmatprep.mubr.bf16.mxu1 %v407_v47 }
 0x102   : > { %806 = vmatmul.mubr.bf16.gmra.mxu1 %v408_v48 }
 0x1ba   : > { %v803_v50 = vpop.f32.mrf.mxu1 }
 0x1bb   : > { %v523_v51 = vadd.f32 %v803_v50, %v687_v49 }
 0x1bc   : > { %v514_v52 = vpop.f32.mrf.mxu1 }
 0x1bd   : > { %v547_v53 = vmax.f32 %v523_v51, 1e-12  ;;  %v515_v54 = vadd.f32 %v687_v49, %v514_v52 }
 0x1be   : > { %v804_v55 = vpop.f32.mrf.mxu1 }
 0x1bf   : > { %v545_v56 = vmax.f32 %v515_v54, 1e-12  ;;  %v526_v57 = vadd.f32 %v804_v55, %v687_v49  ;;  %837 = vrsqrt.f32 %v547_v53 }
 0x1c0   : > { %v517_v58 = vpop.f32.mrf.mxu1 }
 0x1c1   : > { %v548_v59 = vmax.f32 %v526_v57, 1e-12  ;;  %v518_v60 = vadd.f32 %v687_v49, %v517_v58  ;;  %839 = vrsqrt.f32 %v545_v56 }
 0x1c2   : > { %v807_v61 = vpop.f32.mrf.mxu1 }
 0x1c3   : > { %841 = vrsqrt.f32 %v548_v59  ;;  %v546_v62 = vmax.f32 %v518_v60, 1e-12  ;;  %v539_v63 = vadd.f32 %v807_v61, %v687_v49 }
 0x1c4   : > { %v530_v0 = vpop.f32.mrf.mxu1 }
 0x1c5   : > { %843 = vrsqrt.f32 %v546_v62  ;;  %v551_v1 = vmax.f32 %v539_v63, 1e-12  ;;  %v531_v2 = vadd.f32 %v687_v49, %v530_v0 }
 0x1c6   : > { %v808_v3 = vpop.f32.mrf.mxu1 }
 0x1c7   : > { %v549_v4 = vmax.f32 %v531_v2, 1e-12  ;;  %v542_v5 = vadd.f32 %v808_v3, %v687_v49  ;;  %845 = vrsqrt.f32 %v551_v1 }
 0x1c8   : > { %v533_v6 = vpop.f32.mrf.mxu1 }
 0x1c9   : > { %v552_v7 = vmax.f32 %v542_v5, 1e-12  ;;  %v534_v8 = vadd.f32 %v687_v49, %v533_v6  ;;  %847 = vrsqrt.f32 %v549_v4 }
 0x1cb   : > { %849 = vrsqrt.f32 %v552_v7  ;;  %v550_v9 = vmax.f32 %v534_v8, 1e-12 }
 0x1cc   : > { %v838_v10 = vpop.eup %837 }
 0x1cd   : > { %851 = vrsqrt.f32 %v550_v9  ;;  %v563_v13 = vmul.f32 %v838_v10, %v968_v26 }
 0x1ce   : > { %v840_v11 = vpop.eup %839 }
 0x1cf   : > { %v561_v16 = vmul.f32 %v840_v11, %v964_v24 }
 0x1d0   : > { %v842_v12 = vpop.eup %841 }
 0x1d1   : > { %v564_v14 = vmul.f32 %v842_v12, %v966_v25 }
 0x1d2   : > { %v844_v15 = vpop.eup %843 }
 0x1d3   : > { %v722_v17 = vpack.c.bf16 %v564_v14, %v563_v13  ;;  %v562_v18 = vmul.f32 %v844_v15, %v970_v28 }
 0x1d4   : > { %v846_v20 = vpop.eup %845 }
 0x1d5   : > { %734 = vst [vmem:[%s226_s16 + $0x8] sm:$0xff] %v722_v17   ;;  %v717_v19 = vpack.c.bf16 %v562_v18, %v561_v16  ;;  %v567_v23 = vmul.f32 %v846_v20, %v391_v40 }
 0x1d6   : > { %v848_v21 = vpop.eup %847 }
 0x1d7   : > { %718 = vst [vmem:[%s226_s16] sm:$0xff] %v717_v19   ;;  %v565_v27 = vmul.f32 %v848_v21, %v980_v38 }
 0x1d8   : > { %v850_v22 = vpop.eup %849 }
 0x1d9   : > { %v568_v25 = vmul.f32 %v850_v22, %v982_v39 }
 0x1da   : > { %v852_v26 = vpop.eup %851 }
 0x1db   : > { %v732_v29 = vpack.c.bf16 %v568_v25, %v567_v23  ;;  %v566_v30 = vmul.f32 %v852_v26, %v984_v42 }
 0x1dd   : > { %736 = vst [vmem:[%s226_s16 + $0x18] sm:$0xff] %v732_v29   ;;  %v727_v24 = vpack.c.bf16 %v566_v30, %v565_v27 }
 0x1df   : > { %735 = vst [vmem:[%s226_s16 + $0x10] sm:$0xff] %v727_v24  }
 0x1e0 PF: > { %s15_s18 = sadd.s32 1, %s859_s18  }
 0x1e1   : > { %p12_p4 = scmp.ge.s32.totalorder %s15_s18, 4  }
 0x1e3   :  { %14 = sbr.rel (!%p12_p4) target bundleno = 1 (0x1), region = 70 }

// kernel: hyperprior_analysis.5
= control target key start
LH: loop header
LB: loop body
LE: loop exit
PB: predicated region body
PF: predicated region fallthrough
CT: control target
= control target key end

     0   :  { %s1428_s18 = smov 0   ;;  %s1678_s0 = inlined_call_operand.vmem [shape: bf16[32,896], index: 0, kind: input, shape index: {}]   ;;  %s1679_s1 = inlined_call_operand.vmem [shape: bf16[896,128], index: 1, kind: input, shape index: {}]   ;;  %s1680_s2 = inlined_call_operand.vmem [shape: f32[1,128], index: 2, kind: input, shape index: {}]   ;;  %s1681_s3 = inlined_call_operand.vmem [shape: bf16[128,128], index: 3, kind: input, shape index: {}]   ;;  %s1682_s4 = inlined_call_operand.vmem [shape: f32[1,128], index: 4, kind: input, shape index: {}]   ;;  %s1683_s5 = inlined_call_operand.vmem [shape: bf16[32,128], index: 5, kind: output, shape index: {}]  }
   0x1 LB: > { %s1082_s19 = sadd.s32 4294967295, %s1394_s18   ;;  %p1086_p0 = scmp.ge.s32.totalorder %s1394_s18, 1  ;;  %s1394_s18 = sphi %s1428_s18, %s15_s18  }
   0x2   : > { %p189_p1 = scmp.lt.s32.totalorder %s1394_s18, 3 }
   0x4   : > { %p190_p2 = pnand %p1086_p0, %p189_p1 }
   0x5   : > { %s1087_s27 = sshll.u32 (!%p190_p2), %s1082_s19, 1 }
   0x6   : > { %193 = sbr.rel (%p190_p2) target bundleno = 506 (0x1fa), region = 40  ;;  %p219_p3 = scmp.lt.s32.totalorder (!%p190_p2), %s1087_s27, 3 }
   0xb   : > { %v1310_v0 = vld [vmem:[%s1679_s1 + $0x78] sm:$0xff]   ;;  %v1314_v4 = vld [vmem:[%s1679_s1 + $0x70] sm:$0xff]   ;;  %v1318_v8 = vld [vmem:[%s1679_s1 + $0x68] sm:$0xff]   ;;  %s1685_s27 = smov (!%p219_p3, %s1087_s27), 3  ;;  %v1396_v36 = vmov 0.0   ;;  %vm1397_vm0 = vmmov 0  }
   0xc   : > { %v1311_v1 = vld [vmem:[%s1679_s1 + $0xf8] sm:$0xff]   ;;  %1175 = vmatprep.subr.bf16.mxu0 %v1310_v0  ;;  %v1315_v5 = vld [vmem:[%s1679_s1 + $0xf0] sm:$0xff]   ;;  %v1319_v9 = vld [vmem:[%s1679_s1 + $0xe8] sm:$0xff]   ;;  %s1299_s26 = smul.u32 28, %s1685_s27  ;;  %s1090_s20 = sshll.u32 %s1685_s27, 2 }
   0xd   : > { %v1312_v2 = vld [vmem:[%s1679_s1 + $0x38] sm:$0xff]   ;;  %1197 = vmatprep.subr.bf16.mxu1 %v1311_v1  ;;  %v1316_v6 = vld [vmem:[%s1679_s1 + $0x30] sm:$0xff]   ;;  %v1320_v10 = vld [vmem:[%s1679_s1 + $0x28] sm:$0xff]   ;;  %s229_s23 = scalar_lea.vmem %s1683_s5, %s1090_s20 }
   0xe   : > { %v1313_v3 = vld [vmem:[%s1679_s1 + $0xb8] sm:$0xff]   ;;  %1176 = vmatpush3.bf16.msra.mxu0 %v1312_v2  ;;  %v1317_v7 = vld [vmem:[%s1679_s1 + $0xb0] sm:$0xff]   ;;  %v1321_v11 = vld [vmem:[%s1679_s1 + $0xa8] sm:$0xff]   ;;  %s1534_s12 = scalar_lea.vmem %s1678_s0, %s1299_s26 }
   0xf   : > { %1198 = vmatpush3.bf16.msra.mxu1 %v1313_v3  ;;  %1177 = vmatprep.subr.bf16.mxu0 %v1314_v4  ;;  %v1322_v12 = vld [vmem:[%s1679_s1 + $0x60] sm:$0xff]   ;;  %v1326_v16 = vld [vmem:[%s1679_s1 + $0x58] sm:$0xff]   ;;  %v1330_v20 = vld [vmem:[%s1679_s1 + $0x50] sm:$0xff]  }
  0x10   : > { %1199 = vmatprep.subr.bf16.mxu1 %v1315_v5  ;;  %v1323_v13 = vld [vmem:[%s1679_s1 + $0xe0] sm:$0xff]   ;;  %v1327_v17 = vld [vmem:[%s1679_s1 + $0xd8] sm:$0xff]   ;;  %v1331_v21 = vld [vmem:[%s1679_s1 + $0xd0] sm:$0xff]  }
  0x11   : > { %v1324_v14 = vld [vmem:[%s1679_s1 + $0x20] sm:$0xff]   ;;  %v1328_v18 = vld [vmem:[%s1679_s1 + $0x18] sm:$0xff]   ;;  %v1332_v22 = vld [vmem:[%s1679_s1 + $0x10] sm:$0xff]  }
  0x12   : > { %1178 = vmatpush3.bf16.msra.mxu0 %v1316_v6  ;;  %v1325_v15 = vld [vmem:[%s1679_s1 + $0xa0] sm:$0xff]   ;;  %v1329_v19 = vld [vmem:[%s1679_s1 + $0x98] sm:$0xff]   ;;  %v1333_v23 = vld [vmem:[%s1679_s1 + $0x90] sm:$0xff]  }
  0x13   : > { %1200 = vmatpush3.bf16.msra.mxu1 %v1317_v7  ;;  %1179 = vmatprep.subr.bf16.mxu0 %v1318_v8  ;;  %v1334_v24 = vld [vmem:[%s1679_s1 + $0x48] sm:$0xff]   ;;  %v1338_v28 = vld [vmem:[%s1679_s1 + $0x40] sm:$0xff]   ;;  %v1348_v37 = vld [vmem:[%s1679_s1 + $0x178] sm:$0xff]  }
  0x14   : > { %1201 = vmatprep.subr.bf16.mxu1 %v1319_v9  ;;  %v1335_v25 = vld [vmem:[%s1679_s1 + $0xc8] sm:$0xff]   ;;  %v1339_v29 = vld [vmem:[%s1679_s1 + $0xc0] sm:$0xff]   ;;  %v1349_v38 = vld [vmem:[%s1679_s1 + $0x138] sm:$0xff]  }
  0x15   : > { %v1336_v26 = vld [vmem:[%s1679_s1 + $0x8] sm:$0xff]   ;;  %v1340_v30 = vld [vmem:[%s1679_s1] sm:$0xff]   ;;  %v1350_v39 = vld [vmem:[%s1679_s1 + $0x1b8] sm:$0xff]  }
  0x16   : > { %1180 = vmatpush3.bf16.msra.mxu0 %v1320_v10  ;;  %v1337_v27 = vld [vmem:[%s1679_s1 + $0x88] sm:$0xff]   ;;  %v1341_v31 = vld [vmem:[%s1679_s1 + $0x80] sm:$0xff]   ;;  %v1351_v40 = vld [vmem:[%s1679_s1 + $0x170] sm:$0xff]  }
  0x17   : > { %1202 = vmatpush3.bf16.msra.mxu1 %v1321_v11  ;;  %1181 = vmatprep.subr.bf16.mxu0 %v1322_v12  ;;  %v1342_v32 = vld [vmem:[%s1534_s12] ss:$28 sps:$4 sm:$0xff]   ;;  %v1345_v34 = vld [vmem:[%s1534_s12 + $0x8] ss:$28 sps:$4 sm:$0xff]   ;;  %v1352_v41 = vld [vmem:[%s1679_s1 + $0x130] sm:$0xff]  }
  0x18   : > { %1203 = vmatprep.subr.bf16.mxu1 %v1323_v13  ;;  %v1344_v33 = vld [vmem:[%s1534_s12 + $0x4] ss:$28 sps:$4 sm:$0xff]   ;;  %v1347_v35 = vld [vmem:[%s1534_s12 + $0xc] ss:$28 sps:$4 sm:$0xff]   ;;  %v1353_v42 = vld [vmem:[%s1679_s1 + $0x1b0] sm:$0xff]  }
  0x19   : > { %763 = vmatprep.mubr.bf16.mxu0 %v1344_v33  ;;  %804 = vmatprep.mubr.bf16.mxu1 %v1347_v35  ;;  %v1354_v43 = vld [vmem:[%s1679_s1 + $0x168] sm:$0xff]   ;;  %v1357_v46 = vld [vmem:[%s1679_s1 + $0x160] sm:$0xff]   ;;  %v1360_v49 = vld [vmem:[%s1679_s1 + $0x158] sm:$0xff]  }
  0x1a   : > { %1182 = vmatpush3.bf16.msra.mxu0 %v1324_v14  ;;  %v1355_v44 = vld [vmem:[%s1679_s1 + $0x128] sm:$0xff]   ;;  %v1358_v47 = vld [vmem:[%s1679_s1 + $0x120] sm:$0xff]   ;;  %v1361_v50 = vld [vmem:[%s1679_s1 + $0x118] sm:$0xff]  }
  0x1b   : > { %1204 = vmatpush3.bf16.msra.mxu1 %v1325_v15  ;;  %1183 = vmatprep.subr.bf16.mxu0 %v1326_v16  ;;  %v1356_v45 = vld [vmem:[%s1679_s1 + $0x1a8] sm:$0xff]   ;;  %v1359_v48 = vld [vmem:[%s1679_s1 + $0x1a0] sm:$0xff]   ;;  %v1362_v51 = vld [vmem:[%s1679_s1 + $0x198] sm:$0xff]  }
  0x1c   : > { %1205 = vmatprep.subr.bf16.mxu1 %v1327_v17  ;;  %v1363_v52 = vld [vmem:[%s1679_s1 + $0x150] sm:$0xff]   ;;  %v1366_v55 = vld [vmem:[%s1679_s1 + $0x148] sm:$0xff]   ;;  %v1369_v58 = vld [vmem:[%s1679_s1 + $0x140] sm:$0xff]  }
  0x1d   : > { %v1364_v53 = vld [vmem:[%s1679_s1 + $0x110] sm:$0xff]   ;;  %v1367_v56 = vld [vmem:[%s1679_s1 + $0x108] sm:$0xff]   ;;  %v1370_v60 = vld [vmem:[%s1679_s1 + $0x100] sm:$0xff]  }
  0x1e   : > { %1184 = vmatpush3.bf16.msra.mxu0 %v1328_v18  ;;  %v1365_v54 = vld [vmem:[%s1679_s1 + $0x190] sm:$0xff]   ;;  %v1368_v57 = vld [vmem:[%s1679_s1 + $0x188] sm:$0xff]   ;;  %v1371_v61 = vld [vmem:[%s1679_s1 + $0x180] sm:$0xff]  }
  0x1f   : > { %1206 = vmatpush3.bf16.msra.mxu1 %v1329_v19  ;;  %1185 = vmatprep.subr.bf16.mxu0 %v1330_v20  ;;  %v1374_v59 = vld [vmem:[%s1534_s12 + $0x14] ss:$28 sps:$4 sm:$0xff]   ;;  %v1376_v0 = vld [vmem:[%s1681_s3 + $0x38] sm:$0xff]   ;;  %v1378_v2 = vld [vmem:[%s1681_s3 + $0x28] sm:$0xff]  }
  0x20   : > { %1207 = vmatprep.subr.bf16.mxu1 %v1331_v21  ;;  %v1372_v62 = vld [vmem:[%s1534_s12 + $0x10] ss:$28 sps:$4 sm:$0xff]   ;;  %v1375_v63 = vld [vmem:[%s1534_s12 + $0x18] ss:$28 sps:$4 sm:$0xff]   ;;  %v1379_v3 = vld [vmem:[%s1681_s3 + $0x20] sm:$0xff]  }
  0x21   : > { %v1377_v1 = vld [vmem:[%s1681_s3 + $0x30] sm:$0xff]   ;;  %v1380_v4 = vld [vmem:[%s1681_s3 + $0x18] sm:$0xff]   ;;  %v1382_v6 = vld [vmem:[%s1681_s3 + $0x8] sm:$0xff]  }
  0x22   : > { %1186 = vmatpush3.bf16.msra.mxu0 %v1332_v22  ;;  %v1381_v5 = vld [vmem:[%s1681_s3 + $0x10] sm:$0xff]   ;;  %v1383_v7 = vld [vmem:[%s1681_s3] sm:$0xff]  }
  0x23   : > { %1208 = vmatpush3.bf16.msra.mxu1 %v1333_v23  ;;  %1187 = vmatprep.subr.bf16.mxu0 %v1334_v24  ;;  %v1091_v15 = vld [vmem:[%s1680_s2] ss:$0 sm:$0xff] }
  0x24   : > { %1209 = vmatprep.subr.bf16.mxu1 %v1335_v25 }
  0x26   : > { %1188 = vmatpush3.bf16.msra.mxu0 %v1336_v26 }
  0x27   : > { %1210 = vmatpush3.bf16.msra.mxu1 %v1337_v27  ;;  %1189 = vmatprep.subr.bf16.mxu0 %v1338_v28 }
  0x28   : > { %1211 = vmatprep.subr.bf16.mxu1 %v1339_v29 }
  0x2a   : > { %1190 = vmatpush3.bf16.msra.mxu0 %v1340_v30 }
  0x2b   : > { %1212 = vmatpush3.bf16.msra.mxu1 %v1341_v31  ;;  %1219 = vmatprep.subr.bf16.mxu0 %v1348_v37 }
  0x2c   : > { %1259 = vmatprep.subr.bf16.mxu1 %v1396_v36 }
  0x2d   : > { %764 = vmatmul.mubr.bf16.vlgmr.msra.gmra.mxu0 %v1342_v32 }
  0x2e   : > { %805 = vmatmul.mubr.bf16.vlgmr.msra.gmra.mxu1 %v1345_v34  ;;  %1220 = vmatpush3.bf16.msra.mxu0 %v1349_v38 }
  0x2f   : > { %1275 = vmatprep.mubr.msk.bf16.mxu1 %vm1397_vm0, %v1396_v36  ;;  %1260 = vmatpush3.bf16.msra.mxu1 %v1350_v39 }
  0x30   : > { %1221 = vmatprep.subr.bf16.mxu0 %v1351_v40  ;;  %1261 = vmatprep.subr.bf16.mxu1 %v1396_v36 }
  0x31   : > { %845 = vmatprep.mubr.bf16.mxu0 %v1374_v59 }
  0x32   : > { %1222 = vmatpush3.bf16.msra.mxu0 %v1352_v41 }
  0x33   : > { %1262 = vmatpush3.bf16.msra.mxu1 %v1353_v42  ;;  %1223 = vmatprep.subr.bf16.mxu0 %v1354_v43  ;;  %v1155_v42 = vld [vmem:[%s1682_s4] ss:$0 sm:$0xff] }
  0x34   : > { %1263 = vmatprep.subr.bf16.mxu1 %v1396_v36 }
  0x36   : > { %1224 = vmatpush3.bf16.msra.mxu0 %v1355_v44 }
  0x37   : > { %1264 = vmatpush3.bf16.msra.mxu1 %v1356_v45  ;;  %1225 = vmatprep.subr.bf16.mxu0 %v1357_v46 }
  0x38   : > { %1265 = vmatprep.subr.bf16.mxu1 %v1396_v36 }
  0x3a   : > { %1226 = vmatpush3.bf16.msra.mxu0 %v1358_v47 }
  0x3b   : > { %1266 = vmatpush3.bf16.msra.mxu1 %v1359_v48  ;;  %1227 = vmatprep.subr.bf16.mxu0 %v1360_v49 }
  0x3c   : > { %1267 = vmatprep.subr.bf16.mxu1 %v1396_v36 }
  0x3e   : > { %1228 = vmatpush3.bf16.msra.mxu0 %v1361_v50 }
  0x3f   : > { %1268 = vmatpush3.bf16.msra.mxu1 %v1362_v51  ;;  %1229 = vmatprep.subr.bf16.mxu0 %v1363_v52 }
  0x40   : > { %1269 = vmatprep.subr.bf16.mxu1 %v1396_v36 }
  0x42   : > { %1230 = vmatpush3.bf16.msra.mxu0 %v1364_v53 }
  0x43   : > { %1270 = vmatpush3.bf16.msra.mxu1 %v1365_v54  ;;  %1231 = vmatprep.subr.bf16.mxu0 %v1366_v55 }
  0x44   : > { %1271 = vmatprep.subr.bf16.mxu1 %v1396_v36 }
  0x46   : > { %1232 = vmatpush3.bf16.msra.mxu0 %v1367_v56 }
  0x47   : > { %1272 = vmatpush3.bf16.msra.mxu1 %v1368_v57  ;;  %1233 = vmatprep.subr.bf16.mxu0 %v1369_v58 }
  0x48   : > { %1273 = vmatprep.subr.bf16.mxu1 %v1396_v36 }
  0x4a   : > { %1234 = vmatpush3.bf16.msra.mxu0 %v1370_v60 }
  0x4b   : > { %1274 = vmatpush3.bf16.msra.mxu1 %v1371_v61  ;;  %1279 = vmatprep.subr.bf16.mxu0 %v1396_v36 }
  0x4d   : > { %846 = vmatmul.mubr.bf16.vlgmr.msra.gmra.mxu0 %v1372_v62 }
  0x4e   : > { %1276 = vmatmul.mubr.bf16.vlgmr.msra.gmra.mxu1 %v1375_v63  ;;  %1295 = vmatprep.mubr.msk.bf16.mxu0 %vm1397_vm0, %v1396_v36 }
  0x4f   : > { %1280 = vmatpush3.bf16.msra.mxu0 %v1376_v0 }
  0x50   : > { %1281 = vmatprep.subr.bf16.mxu0 %v1396_v36 }
  0x53   : > { %1282 = vmatpush3.bf16.msra.mxu0 %v1377_v1 }
  0x54   : > { %1283 = vmatprep.subr.bf16.mxu0 %v1396_v36 }
  0x57   : > { %1284 = vmatpush3.bf16.msra.mxu0 %v1378_v2 }
  0x58   : > { %1285 = vmatprep.subr.bf16.mxu0 %v1396_v36 }
  0x5b   : > { %1286 = vmatpush3.bf16.msra.mxu0 %v1379_v3 }
  0x5c   : > { %1287 = vmatprep.subr.bf16.mxu0 %v1396_v36 }
  0x5f   : > { %1288 = vmatpush3.bf16.msra.mxu0 %v1380_v4 }
  0x60   : > { %1289 = vmatprep.subr.bf16.mxu0 %v1396_v36 }
  0x63   : > { %1290 = vmatpush3.bf16.msra.mxu0 %v1381_v5 }
  0x64   : > { %1291 = vmatprep.subr.bf16.mxu0 %v1396_v36 }
  0x67   : > { %1292 = vmatpush3.bf16.msra.mxu0 %v1382_v6 }
  0x68   : > { %1293 = vmatprep.subr.bf16.mxu0 %v1396_v36 }
  0x6b   : > { %1294 = vmatpush3.bf16.msra.mxu0 %v1383_v7 }
  0xed   : > { %v1191_v8 = vpop.f32.mrf.mxu0 }
  0xee   : > { %v1213_v9 = vpop.f32.mrf.mxu1 }
  0xef   : > { %v1192_v10 = vpop.f32.mrf.mxu0 }
  0xf0   : > { %v1214_v11 = vpop.f32.mrf.mxu1  ;;  %v1193_v13 = vadd.f32 %v1192_v10, %v1191_v8 }
  0xf1   : > { %v1194_v12 = vpop.f32.mrf.mxu0  ;;  %v1215_v18 = vadd.f32 %v1214_v11, %v1213_v9 }
  0xf2   : > { %v1216_v14 = vpop.f32.mrf.mxu1  ;;  %v766_v17 = vadd.f32 %v1193_v13, %v1091_v15 }
  0xf3   : > { %v1195_v16 = vpop.f32.mrf.mxu0 }
  0xf4   : > { %v1196_v19 = vadd.f32 %v1195_v16, %v1194_v12  ;;  %v1217_v20 = vpop.f32.mrf.mxu1  ;;  %v807_v24 = vadd.f32 %v1215_v18, %v766_v17 }
  0xf5   : > { %v1218_v26 = vadd.f32 %v1217_v20, %v1216_v14 }
  0xf6   : > { %v769_v25 = vadd.f32 %v1196_v19, %v1091_v15 }
  0xf8   : > { %v810_v33 = vadd.f32 %v1218_v26, %v769_v25 }
 0x10d   : > { %v1235_v21 = vpop.f32.mrf.mxu0 }
 0x10e   : > { %v888_v22 = vpop.f32.mrf.mxu1 }
 0x10f   : > { %v1236_v23 = vpop.f32.mrf.mxu0 }
 0x110   : > { %v1237_v27 = vadd.f32 %v1236_v23, %v1235_v21  ;;  %v1277_v28 = vpop.f32.mrf.mxu1 }
 0x111   : > { %v1238_v29 = vpop.f32.mrf.mxu0 }
 0x112   : > { %v848_v30 = vadd.f32 %v1237_v27, %v807_v24  ;;  %v891_v31 = vpop.f32.mrf.mxu1 }
 0x113   : > { %v1239_v32 = vpop.f32.mrf.mxu0 }
 0x114   : > { %v1240_v34 = vadd.f32 %v1239_v32, %v1238_v29  ;;  %v1278_v35 = vpop.f32.mrf.mxu1  ;;  %v889_v36 = vadd.f32 %v888_v22, %v848_v30 }
 0x116   : > { %v851_v37 = vadd.f32 %v1240_v34, %v810_v33  ;;  %v895_v39 = vmul.f32 %v889_v36, %v889_v36 }
 0x118   : > { %v892_v38 = vadd.f32 %v891_v31, %v851_v37 }
 0x11a   : > { %v896_v40 = vmul.f32 %v892_v38, %v892_v38 }
 0x11c   : > { %v897_v41 = vpack.c.bf16 %v896_v40, %v895_v39 }
 0x11e   : > { %1296 = vmatmul.mubr.bf16.vlgmr.msra.gmra.mxu0 %v897_v41 }
 0x1de   : > { %v1003_v43 = vpop.f32.mrf.mxu0 }
 0x1df   : > { %v1004_v44 = vadd.f32 %v1155_v42, %v1003_v43 }
 0x1e0   : > { %v1297_v45 = vpop.f32.mrf.mxu0 }
 0x1e1   : > { %v1010_v46 = vmax.f32 %v1004_v44, 1e-12 }
 0x1e2   : > { %v1006_v47 = vpop.f32.mrf.mxu0 }
 0x1e3   : > { %v1007_v48 = vadd.f32 %v1155_v42, %v1006_v47  ;;  %1384 = vrsqrt.f32 %v1010_v46 }
 0x1e4   : > { %v1298_v49 = vpop.f32.mrf.mxu0 }
 0x1e5   : > { %v1011_v50 = vmax.f32 %v1007_v48, 1e-12 }
 0x1e7   : > { %1386 = vrsqrt.f32 %v1011_v50 }
 0x1f0   : > { %v1385_v51 = vpop.eup %1384 }
 0x1f1   : > { %v1014_v53 = vmul.f32 %v1385_v51, %v889_v36 }
 0x1f4   : > { %v1387_v52 = vpop.eup %1386 }
 0x1f5   : > { %v1015_v54 = vmul.f32 %v1387_v52, %v892_v38 }
 0x1f7   : > { %v1173_v55 = vpack.c.bf16 %v1015_v54, %v1014_v53 }
 0x1f9   : > { %1174 = vst [vmem:[%s229_s23] sm:$0xff] %v1173_v55  }
 0x1fa PF: > { %s15_s18 = sadd.s32 1, %s1394_s18  }
 0x1fb   : > { %p12_p4 = scmp.ge.s32.totalorder %s15_s18, 4  }
 0x1fd   :  { %14 = sbr.rel (!%p12_p4) target bundleno = 1 (0x1), region = 70 }

// kernel: hyperprior_analysis.6
= control target key start
LH: loop header
LB: loop body
LE: loop exit
PB: predicated region body
PF: predicated region fallthrough
CT: control target
= control target key end

     0   :  { %v1059_v39 = vmov 0.0   ;;  %vm1060_vm0 = vmmov 0   ;;  %s1324_s1 = inlined_call_operand.vmem [shape: bf16[896,128], index: 1, kind: input, shape index: {}]   ;;  %s1325_s0 = inlined_call_operand.vmem [shape: bf16[8,896], index: 0, kind: input, shape index: {}]   ;;  %s1326_s3 = inlined_call_operand.vmem [shape: bf16[128,128], index: 3, kind: input, shape index: {}]   ;;  %s1327_s2 = inlined_call_operand.vmem [shape: f32[1,128], index: 2, kind: input, shape index: {}]   ;;  %s1328_s4 = inlined_call_operand.vmem [shape: f32[1,128], index: 4, kind: input, shape index: {}]   ;;  %s1329_s5 = inlined_call_operand.vmem [shape: bf16[8,128], index: 5, kind: output, shape index: {}]  }
   0x1   :  { %v986_v0 = vld [vmem:[%s1324_s1 + $0x78] sm:$0xff]   ;;  %v990_v4 = vld [vmem:[%s1324_s1 + $0x70] sm:$0xff]   ;;  %v994_v8 = vld [vmem:[%s1324_s1 + $0x68] sm:$0xff]  }
   0x2   :  { %v987_v1 = vld [vmem:[%s1324_s1 + $0xf8] sm:$0xff]   ;;  %860 = vmatprep.subr.bf16.mxu0 %v986_v0  ;;  %v991_v5 = vld [vmem:[%s1324_s1 + $0xf0] sm:$0xff]   ;;  %v995_v9 = vld [vmem:[%s1324_s1 + $0xe8] sm:$0xff]  }
   0x3   :  { %v988_v2 = vld [vmem:[%s1324_s1 + $0x38] sm:$0xff]   ;;  %882 = vmatprep.subr.bf16.mxu1 %v987_v1  ;;  %v992_v6 = vld [vmem:[%s1324_s1 + $0x30] sm:$0xff]   ;;  %v996_v10 = vld [vmem:[%s1324_s1 + $0x28] sm:$0xff]  }
   0x4   :  { %v989_v3 = vld [vmem:[%s1324_s1 + $0xb8] sm:$0xff]   ;;  %861 = vmatpush3.bf16.msra.mxu0 %v988_v2  ;;  %v993_v7 = vld [vmem:[%s1324_s1 + $0xb0] sm:$0xff]   ;;  %v997_v11 = vld [vmem:[%s1324_s1 + $0xa8] sm:$0xff]  }
   0x5   :  { %883 = vmatpush3.bf16.msra.mxu1 %v989_v3  ;;  %862 = vmatprep.subr.bf16.mxu0 %v990_v4  ;;  %v998_v12 = vld [vmem:[%s1324_s1 + $0x60] sm:$0xff]   ;;  %v1002_v16 = vld [vmem:[%s1324_s1 + $0x58] sm:$0xff]   ;;  %v1006_v20 = vld [vmem:[%s1324_s1 + $0x50] sm:$0xff]  }
   0x6   :  { %884 = vmatprep.subr.bf16.mxu1 %v991_v5  ;;  %v999_v13 = vld [vmem:[%s1324_s1 + $0xe0] sm:$0xff]   ;;  %v1003_v17 = vld [vmem:[%s1324_s1 + $0xd8] sm:$0xff]   ;;  %v1007_v21 = vld [vmem:[%s1324_s1 + $0xd0] sm:$0xff]  }
   0x7   :  { %v1000_v14 = vld [vmem:[%s1324_s1 + $0x20] sm:$0xff]   ;;  %v1004_v18 = vld [vmem:[%s1324_s1 + $0x18] sm:$0xff]   ;;  %v1008_v22 = vld [vmem:[%s1324_s1 + $0x10] sm:$0xff]  }
   0x8   :  { %863 = vmatpush3.bf16.msra.mxu0 %v992_v6  ;;  %v1001_v15 = vld [vmem:[%s1324_s1 + $0xa0] sm:$0xff]   ;;  %v1005_v19 = vld [vmem:[%s1324_s1 + $0x98] sm:$0xff]   ;;  %v1009_v23 = vld [vmem:[%s1324_s1 + $0x90] sm:$0xff]  }
   0x9   :  { %885 = vmatpush3.bf16.msra.mxu1 %v993_v7  ;;  %864 = vmatprep.subr.bf16.mxu0 %v994_v8  ;;  %v1010_v24 = vld [vmem:[%s1324_s1 + $0x48] sm:$0xff]   ;;  %v1014_v28 = vld [vmem:[%s1324_s1 + $0x40] sm:$0xff]   ;;  %v1022_v38 = vld [vmem:[%s1324_s1 + $0x178] sm:$0xff]  }
   0xa   :  { %886 = vmatprep.subr.bf16.mxu1 %v995_v9  ;;  %v1011_v25 = vld [vmem:[%s1324_s1 + $0xc8] sm:$0xff]   ;;  %v1015_v29 = vld [vmem:[%s1324_s1 + $0xc0] sm:$0xff]   ;;  %v1023_v40 = vld [vmem:[%s1324_s1 + $0x138] sm:$0xff]  }
   0xb   :  { %v1012_v26 = vld [vmem:[%s1324_s1 + $0x8] sm:$0xff]   ;;  %v1016_v30 = vld [vmem:[%s1324_s1] sm:$0xff]   ;;  %v1024_v41 = vld [vmem:[%s1324_s1 + $0x1b8] sm:$0xff]  }
   0xc   :  { %865 = vmatpush3.bf16.msra.mxu0 %v996_v10  ;;  %v1013_v27 = vld [vmem:[%s1324_s1 + $0x88] sm:$0xff]   ;;  %v1017_v31 = vld [vmem:[%s1324_s1 + $0x80] sm:$0xff]   ;;  %v1025_v42 = vld [vmem:[%s1324_s1 + $0x170] sm:$0xff]  }
   0xd   :  { %887 = vmatpush3.bf16.msra.mxu1 %v997_v11  ;;  %866 = vmatprep.subr.bf16.mxu0 %v998_v12  ;;  %v21_v32 = vld [vmem:[%s1325_s0] sm:$0xff]  ;;  %v22_v33 = vld [vmem:[%s1325_s0 + $0x8] sm:$0xff]  ;;  %v1026_v43 = vld [vmem:[%s1324_s1 + $0x130] sm:$0xff]  }
   0xe   :  { %888 = vmatprep.subr.bf16.mxu1 %v999_v13  ;;  %v788_v34 = vcombine.low %v21_v32, %v21_v32  ;;  %v789_v35 = vcombine.high %v21_v32, %v21_v32  ;;  %v790_v36 = vcombine.low %v22_v33, %v22_v33  ;;  %v791_v37 = vcombine.high %v22_v33, %v22_v33  ;;  %v1027_v44 = vld [vmem:[%s1324_s1 + $0x1b0] sm:$0xff]   ;;  %v1028_v45 = vld [vmem:[%s1324_s1 + $0x168] sm:$0xff]   ;;  %v1031_v48 = vld [vmem:[%s1324_s1 + $0x160] sm:$0xff]  }
   0xf   :  { %v1029_v46 = vld [vmem:[%s1324_s1 + $0x128] sm:$0xff]   ;;  %v1032_v49 = vld [vmem:[%s1324_s1 + $0x120] sm:$0xff]   ;;  %v1034_v51 = vld [vmem:[%s1324_s1 + $0x158] sm:$0xff]  }
  0x10   :  { %867 = vmatpush3.bf16.msra.mxu0 %v1000_v14  ;;  %537 = vmatprep.mubr.bf16.mxu0 %v789_v35  ;;  %v1030_v47 = vld [vmem:[%s1324_s1 + $0x1a8] sm:$0xff]   ;;  %v1033_v50 = vld [vmem:[%s1324_s1 + $0x1a0] sm:$0xff]   ;;  %v1035_v52 = vld [vmem:[%s1324_s1 + $0x118] sm:$0xff]  }
  0x11   :  { %889 = vmatpush3.bf16.msra.mxu1 %v1001_v15  ;;  %868 = vmatprep.subr.bf16.mxu0 %v1002_v16  ;;  %v1036_v53 = vld [vmem:[%s1324_s1 + $0x198] sm:$0xff]   ;;  %v1037_v54 = vld [vmem:[%s1324_s1 + $0x150] sm:$0xff]   ;;  %v1040_v57 = vld [vmem:[%s1324_s1 + $0x148] sm:$0xff]  }
  0x12   :  { %890 = vmatprep.subr.bf16.mxu1 %v1003_v17  ;;  %577 = vmatprep.mubr.bf16.mxu1 %v791_v37  ;;  %v1038_v55 = vld [vmem:[%s1324_s1 + $0x110] sm:$0xff]   ;;  %v1041_v59 = vld [vmem:[%s1324_s1 + $0x108] sm:$0xff]   ;;  %v1043_v62 = vld [vmem:[%s1324_s1 + $0x140] sm:$0xff]  }
  0x13   :  { %v1039_v56 = vld [vmem:[%s1324_s1 + $0x190] sm:$0xff]   ;;  %v1042_v61 = vld [vmem:[%s1324_s1 + $0x188] sm:$0xff]   ;;  %v1044_v63 = vld [vmem:[%s1324_s1 + $0x100] sm:$0xff]  }
  0x14   :  { %869 = vmatpush3.bf16.msra.mxu0 %v1004_v18  ;;  %v23_v58 = vld [vmem:[%s1325_s0 + $0x10] sm:$0xff]  ;;  %v1045_v0 = vld [vmem:[%s1324_s1 + $0x180] sm:$0xff]   ;;  %v1048_v2 = vld [vmem:[%s1325_s0 + $0x18] ss:$0 sps:$4 sm:$0xff]  }
  0x15   :  { %891 = vmatpush3.bf16.msra.mxu1 %v1005_v19  ;;  %870 = vmatprep.subr.bf16.mxu0 %v1006_v20  ;;  %v793_v60 = vcombine.high %v23_v58, %v23_v58  ;;  %v792_v1 = vcombine.low %v23_v58, %v23_v58  ;;  %v1049_v3 = vld [vmem:[%s1326_s3 + $0x38] sm:$0xff]   ;;  %v1050_v4 = vld [vmem:[%s1326_s3 + $0x30] sm:$0xff]   ;;  %v1051_v5 = vld [vmem:[%s1326_s3 + $0x28] sm:$0xff]  }
  0x16   :  { %892 = vmatprep.subr.bf16.mxu1 %v1007_v21  ;;  %v1052_v6 = vld [vmem:[%s1326_s3 + $0x20] sm:$0xff]   ;;  %v1053_v7 = vld [vmem:[%s1326_s3 + $0x18] sm:$0xff]   ;;  %v1054_v8 = vld [vmem:[%s1326_s3 + $0x10] sm:$0xff]  }
  0x17   :  { %v1055_v9 = vld [vmem:[%s1326_s3 + $0x8] sm:$0xff]   ;;  %v1056_v10 = vld [vmem:[%s1326_s3] sm:$0xff]  }
  0x18   :  { %871 = vmatpush3.bf16.msra.mxu0 %v1008_v22  ;;  %v787_v20 = vld [vmem:[%s1327_s2] ss:$0 sm:$0xff] }
  0x19   :  { %893 = vmatpush3.bf16.msra.mxu1 %v1009_v23  ;;  %872 = vmatprep.subr.bf16.mxu0 %v1010_v24  ;;  %v851_v37 = vld [vmem:[%s1328_s4] ss:$0 sm:$0xff] }
  0x1a   :  { %894 = vmatprep.subr.bf16.mxu1 %v1011_v25 }
  0x1c   :  { %873 = vmatpush3.bf16.msra.mxu0 %v1012_v26 }
  0x1d   :  { %895 = vmatpush3.bf16.msra.mxu1 %v1013_v27  ;;  %874 = vmatprep.subr.bf16.mxu0 %v1014_v28 }
  0x1e   :  { %896 = vmatprep.subr.bf16.mxu1 %v1015_v29 }
  0x20   :  { %875 = vmatpush3.bf16.msra.mxu0 %v1016_v30 }
  0x21   :  { %897 = vmatpush3.bf16.msra.mxu1 %v1017_v31  ;;  %904 = vmatprep.subr.bf16.mxu0 %v1022_v38 }
  0x22   :  { %944 = vmatprep.subr.bf16.mxu1 %v1059_v39 }
  0x23   :  { %538 = vmatmul.mubr.bf16.vlgmr.msra.gmra.mxu0 %v788_v34 }
  0x24   :  { %578 = vmatmul.mubr.bf16.vlgmr.msra.gmra.mxu1 %v790_v36  ;;  %905 = vmatpush3.bf16.msra.mxu0 %v1023_v40 }
  0x25   :  { %945 = vmatpush3.bf16.msra.mxu1 %v1024_v41  ;;  %906 = vmatprep.subr.bf16.mxu0 %v1025_v42 }
  0x26   :  { %946 = vmatprep.subr.bf16.mxu1 %v1059_v39  ;;  %960 = vmatprep.mubr.msk.bf16.mxu1 %vm1060_vm0, %v1059_v39 }
  0x27   :  { %617 = vmatprep.mubr.bf16.mxu0 %v793_v60 }
  0x28   :  { %907 = vmatpush3.bf16.msra.mxu0 %v1026_v43 }
  0x29   :  { %947 = vmatpush3.bf16.msra.mxu1 %v1027_v44  ;;  %908 = vmatprep.subr.bf16.mxu0 %v1028_v45 }
  0x2a   :  { %948 = vmatprep.subr.bf16.mxu1 %v1059_v39 }
  0x2c   :  { %909 = vmatpush3.bf16.msra.mxu0 %v1029_v46 }
  0x2d   :  { %949 = vmatpush3.bf16.msra.mxu1 %v1030_v47  ;;  %910 = vmatprep.subr.bf16.mxu0 %v1031_v48 }
  0x2e   :  { %950 = vmatprep.subr.bf16.mxu1 %v1059_v39 }
  0x30   :  { %911 = vmatpush3.bf16.msra.mxu0 %v1032_v49 }
  0x31   :  { %951 = vmatpush3.bf16.msra.mxu1 %v1033_v50  ;;  %912 = vmatprep.subr.bf16.mxu0 %v1034_v51 }
  0x32   :  { %952 = vmatprep.subr.bf16.mxu1 %v1059_v39 }
  0x34   :  { %913 = vmatpush3.bf16.msra.mxu0 %v1035_v52 }
  0x35   :  { %953 = vmatpush3.bf16.msra.mxu1 %v1036_v53  ;;  %914 = vmatprep.subr.bf16.mxu0 %v1037_v54 }
  0x36   :  { %954 = vmatprep.subr.bf16.mxu1 %v1059_v39 }
  0x38   :  { %915 = vmatpush3.bf16.msra.mxu0 %v1038_v55 }
  0x39   :  { %955 = vmatpush3.bf16.msra.mxu1 %v1039_v56  ;;  %916 = vmatprep.subr.bf16.mxu0 %v1040_v57 }
  0x3a   :  { %956 = vmatprep.subr.bf16.mxu1 %v1059_v39 }
  0x3c   :  { %917 = vmatpush3.bf16.msra.mxu0 %v1041_v59 }
  0x3d   :  { %957 = vmatpush3.bf16.msra.mxu1 %v1042_v61  ;;  %918 = vmatprep.subr.bf16.mxu0 %v1043_v62 }
  0x3e   :  { %958 = vmatprep.subr.bf16.mxu1 %v1059_v39 }
  0x40   :  { %919 = vmatpush3.bf16.msra.mxu0 %v1044_v63 }
  0x41   :  { %959 = vmatpush3.bf16.msra.mxu1 %v1045_v0  ;;  %964 = vmatprep.subr.bf16.mxu0 %v1059_v39 }
  0x43   :  { %618 = vmatmul.mubr.bf16.vlgmr.msra.gmra.mxu0 %v792_v1 }
  0x44   :  { %961 = vmatmul.mubr.bf16.vlgmr.msra.gmra.mxu1 %v1048_v2  ;;  %980 = vmatprep.mubr.msk.bf16.mxu0 %vm1060_vm0, %v1059_v39 }
  0x45   :  { %965 = vmatpush3.bf16.msra.mxu0 %v1049_v3 }
  0x46   :  { %966 = vmatprep.subr.bf16.mxu0 %v1059_v39 }
  0x49   :  { %967 = vmatpush3.bf16.msra.mxu0 %v1050_v4 }
  0x4a   :  { %968 = vmatprep.subr.bf16.mxu0 %v1059_v39 }
  0x4d   :  { %969 = vmatpush3.bf16.msra.mxu0 %v1051_v5 }
  0x4e   :  { %970 = vmatprep.subr.bf16.mxu0 %v1059_v39 }
  0x51   :  { %971 = vmatpush3.bf16.msra.mxu0 %v1052_v6 }
  0x52   :  { %972 = vmatprep.subr.bf16.mxu0 %v1059_v39 }
  0x55   :  { %973 = vmatpush3.bf16.msra.mxu0 %v1053_v7 }
  0x56   :  { %974 = vmatprep.subr.bf16.mxu0 %v1059_v39 }
  0x59   :  { %975 = vmatpush3.bf16.msra.mxu0 %v1054_v8 }
  0x5a   :  { %976 = vmatprep.subr.bf16.mxu0 %v1059_v39 }
  0x5d   :  { %977 = vmatpush3.bf16.msra.mxu0 %v1055_v9 }
  0x5e   :  { %978 = vmatprep.subr.bf16.mxu0 %v1059_v39 }
  0x61   :  { %979 = vmatpush3.bf16.msra.mxu0 %v1056_v10 }
  0xe3   :  { %v876_v11 = vpop.f32.mrf.mxu0 }
  0xe4   :  { %v898_v12 = vpop.f32.mrf.mxu1 }
  0xe5   :  { %v877_v13 = vpop.f32.mrf.mxu0 }
  0xe6   :  { %v899_v14 = vpop.f32.mrf.mxu1  ;;  %v878_v19 = vadd.f32 %v877_v13, %v876_v11 }
  0xe7   :  { %v879_v15 = vpop.f32.mrf.mxu0  ;;  %v900_v22 = vadd.f32 %v899_v14, %v898_v12 }
  0xe8   :  { %v901_v16 = vpop.f32.mrf.mxu1  ;;  %v540_v21 = vadd.f32 %v878_v19, %v787_v20 }
  0xe9   :  { %v880_v17 = vpop.f32.mrf.mxu0 }
  0xea   :  { %v902_v18 = vpop.f32.mrf.mxu1  ;;  %v580_v26 = vadd.f32 %v900_v22, %v540_v21 }
 0x103   :  { %v920_v23 = vpop.f32.mrf.mxu0 }
 0x104   :  { %v659_v24 = vpop.f32.mrf.mxu1 }
 0x105   :  { %v921_v25 = vpop.f32.mrf.mxu0 }
 0x106   :  { %v922_v27 = vadd.f32 %v921_v25, %v920_v23  ;;  %v962_v28 = vpop.f32.mrf.mxu1 }
 0x107   :  { %v923_v29 = vpop.f32.mrf.mxu0 }
 0x108   :  { %v620_v30 = vadd.f32 %v922_v27, %v580_v26  ;;  %v662_v31 = vpop.f32.mrf.mxu1 }
 0x109   :  { %v924_v32 = vpop.f32.mrf.mxu0 }
 0x10a   :  { %v660_v33 = vadd.f32 %v659_v24, %v620_v30  ;;  %v963_v34 = vpop.f32.mrf.mxu1 }
 0x10c   :  { %v665_v35 = vmul.f32 %v660_v33, %v660_v33 }
 0x10e   :  { %v666_v36 = vpack.c.bf16 %v665_v35, %v665_v35 }
 0x110   :  { %981 = vmatmul.mubr.bf16.vlgmr.msra.gmra.mxu0 %v666_v36 }
 0x1d0   :  { %v772_v38 = vpop.f32.mrf.mxu0 }
 0x1d1   :  { %v773_v39 = vadd.f32 %v851_v37, %v772_v38 }
 0x1d2   :  { %v982_v40 = vpop.f32.mrf.mxu0 }
 0x1d3   :  { %v778_v41 = vmax.f32 %v773_v39, 1e-12 }
 0x1d4   :  { %v775_v42 = vpop.f32.mrf.mxu0 }
 0x1d5   :  { %1057 = vrsqrt.f32 %v778_v41 }
 0x1d6   :  { %v983_v43 = vpop.f32.mrf.mxu0 }
 0x1e2   :  { %v1058_v44 = vpop.eup %1057 }
 0x1e3   :  { %v780_v45 = vmul.f32 %v1058_v44, %v660_v33 }
 0x1e5   :  { %v781_v46 = vpack.c.bf16 %v780_v45, %v780_v45 }
 0x1e7   :  { %782 = vst [vmem:[%s1329_s5] sm:$0xf] %v781_v46 }

// kernel: hyperprior_analysis.7
= control target key start
LH: loop header
LB: loop body
LE: loop exit
PB: predicated region body
PF: predicated region fallthrough
CT: control target
= control target key end

     0   :  { %v888_v39 = vmov 0.0   ;;  %vm889_vm0 = vmmov 0   ;;  %s1096_s1 = inlined_call_operand.vmem [shape: bf16[896,128], index: 1, kind: input, shape index: {}]   ;;  %s1097_s0 = inlined_call_operand.vmem [shape: bf16[8,896], index: 0, kind: input, shape index: {}]   ;;  %s1098_s2 = inlined_call_operand.vmem [shape: f32[1,128], index: 2, kind: input, shape index: {}]   ;;  %s1099_s3 = inlined_call_operand.vmem [shape: f32[8,128], index: 3, kind: output, shape index: {}]  }
   0x1   :  { %v825_v0 = vld [vmem:[%s1096_s1 + $0x78] sm:$0xff]   ;;  %v829_v4 = vld [vmem:[%s1096_s1 + $0x70] sm:$0xff]   ;;  %v833_v8 = vld [vmem:[%s1096_s1 + $0x68] sm:$0xff]  }
   0x2   :  { %v826_v1 = vld [vmem:[%s1096_s1 + $0xf8] sm:$0xff]   ;;  %728 = vmatprep.subr.bf16.mxu0 %v825_v0  ;;  %v830_v5 = vld [vmem:[%s1096_s1 + $0xf0] sm:$0xff]   ;;  %v834_v9 = vld [vmem:[%s1096_s1 + $0xe8] sm:$0xff]  }
   0x3   :  { %v827_v2 = vld [vmem:[%s1096_s1 + $0x38] sm:$0xff]   ;;  %750 = vmatprep.subr.bf16.mxu1 %v826_v1  ;;  %v831_v6 = vld [vmem:[%s1096_s1 + $0x30] sm:$0xff]   ;;  %v835_v10 = vld [vmem:[%s1096_s1 + $0x28] sm:$0xff]  }
   0x4   :  { %v828_v3 = vld [vmem:[%s1096_s1 + $0xb8] sm:$0xff]   ;;  %729 = vmatpush3.bf16.msra.mxu0 %v827_v2  ;;  %v832_v7 = vld [vmem:[%s1096_s1 + $0xb0] sm:$0xff]   ;;  %v836_v11 = vld [vmem:[%s1096_s1 + $0xa8] sm:$0xff]  }
   0x5   :  { %751 = vmatpush3.bf16.msra.mxu1 %v828_v3  ;;  %730 = vmatprep.subr.bf16.mxu0 %v829_v4  ;;  %v837_v12 = vld [vmem:[%s1096_s1 + $0x60] sm:$0xff]   ;;  %v841_v16 = vld [vmem:[%s1096_s1 + $0x58] sm:$0xff]   ;;  %v845_v20 = vld [vmem:[%s1096_s1 + $0x50] sm:$0xff]  }
   0x6   :  { %752 = vmatprep.subr.bf16.mxu1 %v830_v5  ;;  %v838_v13 = vld [vmem:[%s1096_s1 + $0xe0] sm:$0xff]   ;;  %v842_v17 = vld [vmem:[%s1096_s1 + $0xd8] sm:$0xff]   ;;  %v846_v21 = vld [vmem:[%s1096_s1 + $0xd0] sm:$0xff]  }
   0x7   :  { %v839_v14 = vld [vmem:[%s1096_s1 + $0x20] sm:$0xff]   ;;  %v843_v18 = vld [vmem:[%s1096_s1 + $0x18] sm:$0xff]   ;;  %v847_v22 = vld [vmem:[%s1096_s1 + $0x10] sm:$0xff]  }
   0x8   :  { %731 = vmatpush3.bf16.msra.mxu0 %v831_v6  ;;  %v840_v15 = vld [vmem:[%s1096_s1 + $0xa0] sm:$0xff]   ;;  %v844_v19 = vld [vmem:[%s1096_s1 + $0x98] sm:$0xff]   ;;  %v848_v23 = vld [vmem:[%s1096_s1 + $0x90] sm:$0xff]  }
   0x9   :  { %753 = vmatpush3.bf16.msra.mxu1 %v832_v7  ;;  %732 = vmatprep.subr.bf16.mxu0 %v833_v8  ;;  %v849_v24 = vld [vmem:[%s1096_s1 + $0x48] sm:$0xff]   ;;  %v853_v28 = vld [vmem:[%s1096_s1 + $0x40] sm:$0xff]   ;;  %v861_v38 = vld [vmem:[%s1096_s1 + $0x178] sm:$0xff]  }
   0xa   :  { %754 = vmatprep.subr.bf16.mxu1 %v834_v9  ;;  %v850_v25 = vld [vmem:[%s1096_s1 + $0xc8] sm:$0xff]   ;;  %v854_v29 = vld [vmem:[%s1096_s1 + $0xc0] sm:$0xff]   ;;  %v862_v40 = vld [vmem:[%s1096_s1 + $0x138] sm:$0xff]  }
   0xb   :  { %v851_v26 = vld [vmem:[%s1096_s1 + $0x8] sm:$0xff]   ;;  %v855_v30 = vld [vmem:[%s1096_s1] sm:$0xff]   ;;  %v863_v41 = vld [vmem:[%s1096_s1 + $0x1b8] sm:$0xff]  }
   0xc   :  { %733 = vmatpush3.bf16.msra.mxu0 %v835_v10  ;;  %v852_v27 = vld [vmem:[%s1096_s1 + $0x88] sm:$0xff]   ;;  %v856_v31 = vld [vmem:[%s1096_s1 + $0x80] sm:$0xff]   ;;  %v864_v42 = vld [vmem:[%s1096_s1 + $0x170] sm:$0xff]  }
   0xd   :  { %755 = vmatpush3.bf16.msra.mxu1 %v836_v11  ;;  %734 = vmatprep.subr.bf16.mxu0 %v837_v12  ;;  %v15_v32 = vld [vmem:[%s1097_s0] sm:$0xff]  ;;  %v16_v33 = vld [vmem:[%s1097_s0 + $0x8] sm:$0xff]  ;;  %v865_v43 = vld [vmem:[%s1096_s1 + $0x130] sm:$0xff]  }
   0xe   :  { %756 = vmatprep.subr.bf16.mxu1 %v838_v13  ;;  %v665_v34 = vcombine.low %v15_v32, %v15_v32  ;;  %v666_v35 = vcombine.high %v15_v32, %v15_v32  ;;  %v667_v36 = vcombine.low %v16_v33, %v16_v33  ;;  %v668_v37 = vcombine.high %v16_v33, %v16_v33  ;;  %v866_v44 = vld [vmem:[%s1096_s1 + $0x1b0] sm:$0xff]   ;;  %v867_v45 = vld [vmem:[%s1096_s1 + $0x168] sm:$0xff]   ;;  %v870_v48 = vld [vmem:[%s1096_s1 + $0x160] sm:$0xff]  }
   0xf   :  { %v869_v46 = vld [vmem:[%s1096_s1 + $0x1a8] sm:$0xff]   ;;  %v872_v49 = vld [vmem:[%s1096_s1 + $0x1a0] sm:$0xff]   ;;  %v873_v51 = vld [vmem:[%s1096_s1 + $0x158] sm:$0xff]  }
  0x10   :  { %735 = vmatpush3.bf16.msra.mxu0 %v839_v14  ;;  %531 = vmatprep.mubr.bf16.mxu0 %v666_v35  ;;  %v868_v47 = vld [vmem:[%s1096_s1 + $0x128] sm:$0xff]   ;;  %v871_v50 = vld [vmem:[%s1096_s1 + $0x120] sm:$0xff]   ;;  %v875_v52 = vld [vmem:[%s1096_s1 + $0x198] sm:$0xff]  }
  0x11   :  { %757 = vmatpush3.bf16.msra.mxu1 %v840_v15  ;;  %736 = vmatprep.subr.bf16.mxu0 %v841_v16  ;;  %v874_v53 = vld [vmem:[%s1096_s1 + $0x118] sm:$0xff]   ;;  %v876_v54 = vld [vmem:[%s1096_s1 + $0x150] sm:$0xff]   ;;  %v879_v57 = vld [vmem:[%s1096_s1 + $0x148] sm:$0xff]  }
  0x12   :  { %758 = vmatprep.subr.bf16.mxu1 %v842_v17  ;;  %571 = vmatprep.mubr.bf16.mxu1 %v668_v37  ;;  %v878_v55 = vld [vmem:[%s1096_s1 + $0x190] sm:$0xff]   ;;  %v881_v59 = vld [vmem:[%s1096_s1 + $0x188] sm:$0xff]   ;;  %v882_v62 = vld [vmem:[%s1096_s1 + $0x140] sm:$0xff]  }
  0x13   :  { %v877_v56 = vld [vmem:[%s1096_s1 + $0x110] sm:$0xff]   ;;  %v880_v61 = vld [vmem:[%s1096_s1 + $0x108] sm:$0xff]   ;;  %v884_v63 = vld [vmem:[%s1096_s1 + $0x180] sm:$0xff]  }
  0x14   :  { %737 = vmatpush3.bf16.msra.mxu0 %v843_v18  ;;  %v17_v58 = vld [vmem:[%s1097_s0 + $0x10] sm:$0xff]  ;;  %v883_v0 = vld [vmem:[%s1096_s1 + $0x100] sm:$0xff]   ;;  %v887_v1 = vld [vmem:[%s1097_s0 + $0x18] ss:$0 sps:$4 sm:$0xff]  }
  0x15   :  { %759 = vmatpush3.bf16.msra.mxu1 %v844_v19  ;;  %738 = vmatprep.subr.bf16.mxu0 %v845_v20  ;;  %v670_v60 = vcombine.high %v17_v58, %v17_v58  ;;  %v669_v2 = vcombine.low %v17_v58, %v17_v58  ;;  %v664_v12 = vld [vmem:[%s1098_s2] ss:$0 sm:$0xff] }
  0x16   :  { %760 = vmatprep.subr.bf16.mxu1 %v846_v21 }
  0x18   :  { %739 = vmatpush3.bf16.msra.mxu0 %v847_v22 }
  0x19   :  { %761 = vmatpush3.bf16.msra.mxu1 %v848_v23  ;;  %740 = vmatprep.subr.bf16.mxu0 %v849_v24 }
  0x1a   :  { %762 = vmatprep.subr.bf16.mxu1 %v850_v25 }
  0x1c   :  { %741 = vmatpush3.bf16.msra.mxu0 %v851_v26 }
  0x1d   :  { %763 = vmatpush3.bf16.msra.mxu1 %v852_v27  ;;  %742 = vmatprep.subr.bf16.mxu0 %v853_v28 }
  0x1e   :  { %764 = vmatprep.subr.bf16.mxu1 %v854_v29 }
  0x20   :  { %743 = vmatpush3.bf16.msra.mxu0 %v855_v30 }
  0x21   :  { %765 = vmatpush3.bf16.msra.mxu1 %v856_v31  ;;  %772 = vmatprep.subr.bf16.mxu0 %v861_v38 }
  0x22   :  { %803 = vmatprep.subr.bf16.mxu1 %v888_v39 }
  0x23   :  { %532 = vmatmul.mubr.bf16.vlgmr.msra.gmra.mxu0 %v665_v34 }
  0x24   :  { %572 = vmatmul.mubr.bf16.vlgmr.msra.gmra.mxu1 %v667_v36  ;;  %773 = vmatpush3.bf16.msra.mxu0 %v862_v40 }
  0x25   :  { %804 = vmatpush3.bf16.msra.mxu1 %v863_v41  ;;  %774 = vmatprep.subr.bf16.mxu0 %v864_v42 }
  0x26   :  { %805 = vmatprep.subr.bf16.mxu1 %v888_v39  ;;  %819 = vmatprep.mubr.msk.bf16.mxu1 %vm889_vm0, %v888_v39 }
  0x27   :  { %611 = vmatprep.mubr.bf16.mxu0 %v670_v60 }
  0x28   :  { %775 = vmatpush3.bf16.msra.mxu0 %v865_v43 }
  0x29   :  { %806 = vmatpush3.bf16.msra.mxu1 %v866_v44  ;;  %776 = vmatprep.subr.bf16.mxu0 %v867_v45 }
  0x2a   :  { %807 = vmatprep.subr.bf16.mxu1 %v888_v39 }
  0x2c   :  { %777 = vmatpush3.bf16.msra.mxu0 %v868_v47 }
  0x2d   :  { %808 = vmatpush3.bf16.msra.mxu1 %v869_v46  ;;  %778 = vmatprep.subr.bf16.mxu0 %v870_v48 }
  0x2e   :  { %809 = vmatprep.subr.bf16.mxu1 %v888_v39 }
  0x30   :  { %779 = vmatpush3.bf16.msra.mxu0 %v871_v50 }
  0x31   :  { %810 = vmatpush3.bf16.msra.mxu1 %v872_v49  ;;  %780 = vmatprep.subr.bf16.mxu0 %v873_v51 }
  0x32   :  { %811 = vmatprep.subr.bf16.mxu1 %v888_v39 }
  0x34   :  { %781 = vmatpush3.bf16.msra.mxu0 %v874_v53 }
  0x35   :  { %812 = vmatpush3.bf16.msra.mxu1 %v875_v52  ;;  %782 = vmatprep.subr.bf16.mxu0 %v876_v54 }
  0x36   :  { %813 = vmatprep.subr.bf16.mxu1 %v888_v39 }
  0x38   :  { %783 = vmatpush3.bf16.msra.mxu0 %v877_v56 }
  0x39   :  { %814 = vmatpush3.bf16.msra.mxu1 %v878_v55  ;;  %784 = vmatprep.subr.bf16.mxu0 %v879_v57 }
  0x3a   :  { %815 = vmatprep.subr.bf16.mxu1 %v888_v39 }
  0x3c   :  { %785 = vmatpush3.bf16.msra.mxu0 %v880_v61 }
  0x3d   :  { %816 = vmatpush3.bf16.msra.mxu1 %v881_v59  ;;  %786 = vmatprep.subr.bf16.mxu0 %v882_v62 }
  0x3e   :  { %817 = vmatprep.subr.bf16.mxu1 %v888_v39 }
  0x40   :  { %787 = vmatpush3.bf16.msra.mxu0 %v883_v0 }
  0x41   :  { %818 = vmatpush3.bf16.msra.mxu1 %v884_v63 }
  0x43   :  { %612 = vmatmul.mubr.bf16.vlgmr.msra.gmra.mxu0 %v669_v2 }
  0x44   :  { %820 = vmatmul.mubr.bf16.vlgmr.msra.gmra.mxu1 %v887_v1 }
  0xe3   :  { %v744_v3 = vpop.f32.mrf.mxu0 }
  0xe4   :  { %v766_v4 = vpop.f32.mrf.mxu1 }
  0xe5   :  { %v745_v5 = vpop.f32.mrf.mxu0 }
  0xe6   :  { %v767_v6 = vpop.f32.mrf.mxu1  ;;  %v746_v11 = vadd.f32 %v745_v5, %v744_v3 }
  0xe7   :  { %v747_v7 = vpop.f32.mrf.mxu0  ;;  %v768_v14 = vadd.f32 %v767_v6, %v766_v4 }
  0xe8   :  { %v769_v8 = vpop.f32.mrf.mxu1  ;;  %v534_v13 = vadd.f32 %v746_v11, %v664_v12 }
  0xe9   :  { %v748_v9 = vpop.f32.mrf.mxu0 }
  0xea   :  { %v770_v10 = vpop.f32.mrf.mxu1  ;;  %v574_v19 = vadd.f32 %v768_v14, %v534_v13 }
 0x103   :  { %v788_v16 = vpop.f32.mrf.mxu0 }
 0x104   :  { %v653_v15 = vpop.f32.mrf.mxu1 }
 0x105   :  { %v789_v18 = vpop.f32.mrf.mxu0 }
 0x106   :  { %v821_v17 = vpop.f32.mrf.mxu1  ;;  %v790_v20 = vadd.f32 %v789_v18, %v788_v16 }
 0x107   :  { %v791_v22 = vpop.f32.mrf.mxu0 }
 0x108   :  { %v656_v21 = vpop.f32.mrf.mxu1  ;;  %v614_v23 = vadd.f32 %v790_v20, %v574_v19 }
 0x109   :  { %v792_v25 = vpop.f32.mrf.mxu0 }
 0x10a   :  { %v822_v24 = vpop.f32.mrf.mxu1  ;;  %v654_v26 = vadd.f32 %v653_v15, %v614_v23 }
 0x10c   :  { %659 = vst [vmem:[%s1099_s3] sm:$0xff] %v654_v26 }

</bundles_post_ra>
